<compile_context>
chip_gen: v7x
topology: tpu7x:2x2x1
jax: 0.10.0
libtpu: 0.0.40
codegen_flags: <defaults>
</compile_context>

<pallas_src>
import functools

import jax
import jax.numpy as jnp
from jax import lax
from jax.experimental import pallas as pl
from jax.experimental.pallas import tpu as pltpu


def _round_up(x, m):
    return (x + m - 1) // m * m


def _im2col(img, *, K, P, H, W):
    """img: (Cp, H*W) f32, spatial flattened on lanes.

    Returns (K*K*Cp, H*W) patches for a stride-1 'same' (zero-padded) conv,
    rows ordered tap-major ((kh, kw) outer, channel inner). Taps are produced
    with lane rolls + validity masks -- no padded scratch is materialized.
    """
    Cp, HW = img.shape
    col = lax.broadcasted_iota(jnp.int32, (1, HW), 1)
    if W & (W - 1) == 0:                     # power-of-two fast path (shifts only)
        hh = col >> (W.bit_length() - 1)
        ww = col & (W - 1)
    else:
        hh = col // W
        ww = col - hh * W

    taps = []
    for kh in range(K):
        for kw in range(K):
            dh, dw = kh - P, kw - P
            if dh == 0 and dw == 0:
                taps.append(img)
                continue
            s = dh * W + dw                   # flat offset of this tap
            shifted = pltpu.roll(img, shift=(-s) % HW, axis=1)
            valid = ((hh + dh >= 0) & (hh + dh < H) &
                     (ww + dw >= 0) & (ww + dw < W))
            taps.append(jnp.where(valid, shifted, 0.0))
    return jnp.concatenate(taps, axis=0)      # (K*K*Cp, H*W)


def _resblock_ch_kernel(x_ref, w1_ref, w2_ref, wd_ref, out_ref, *, K, P, H, W):
    """One batch element.

    x_ref  : (Cp, H*W)  f32   input image (channels zero-padded to Cp)
    w1_ref : (Cp, K*K*Cp) bf16  conv1 weight, im2col layout
    w2_ref : (Cp, K*K*Cp) bf16  conv2 weight
    wd_ref : (Pp, K*K*Cp) bf16  ds conv weight (out channels padded to Pp)
    out_ref: (Pp, H*W)  f32   dense (stride-1) ds output
    """
    x = x_ref[...].astype(jnp.float32)

    # conv1 + ReLU : single im2col matmul, bf16 operands, f32 accumulation
    p1 = _im2col(x, K=K, P=P, H=H, W=W).astype(jnp.bfloat16)
    y1 = jnp.dot(w1_ref[...], p1, preferred_element_type=jnp.float32)
    y1 = jnp.maximum(y1, 0.0)

    # conv2
    p2 = _im2col(y1, K=K, P=P, H=H, W=W).astype(jnp.bfloat16)
    y2 = jnp.dot(w2_ref[...], p2, preferred_element_type=jnp.float32)

    # residual add (f32)
    y3 = y2 + x

    # ds conv, computed dense; the wrapper applies the stride by subsampling.
    p3 = _im2col(y3, K=K, P=P, H=H, W=W).astype(jnp.bfloat16)
    out = jnp.dot(wd_ref[...], p3, preferred_element_type=jnp.float32)

    out_ref[...] = out.astype(out_ref.dtype)


def _weight_to_mat(w, cin_pad, cout_pad):
    """(Cout, Cin, K, K) OIHW -> (cout_pad, K*K*cin_pad) bf16, tap-major columns."""
    cout, cin, K, _ = w.shape
    w = jnp.transpose(w, (0, 2, 3, 1))                             # (Cout, K, K, Cin)
    w = jnp.pad(w, ((0, cout_pad - cout), (0, 0), (0, 0), (0, cin_pad - cin)))
    return w.reshape(cout_pad, K * K * cin_pad).astype(jnp.bfloat16)


def resblock_ch_forward(x_nchw, w1, w2, wd, stride):
    """ResBlock_CH forward. x: (N, C, H, W) f32; weights in PyTorch OIHW layout."""
    N, C, H, W = x_nchw.shape
    K = w1.shape[-1]
    planes = wd.shape[0]
    padding = {3: 1, 5: 2, 7: 3, 9: 4}.get(K, 0)
    # TODO(synk): kernel sizes outside {3,5,7,9} use padding=0 ("valid") in the
    # module; only the 'same'-padding odd-kernel path is implemented here.
    assert padding == (K - 1) // 2, "only 'same'-padding kernels (3/5/7/9) supported"

    HW = H * W
    Cp = _round_up(C, 8)          # sublane-aligned channel slabs
    Pp = _round_up(planes, 8)

    # Glue: NCHW with flattened spatial is already (C, H*W) per image -> reshape only.
    x2d = jnp.pad(x_nchw.reshape(N, C, HW), ((0, 0), (0, Cp - C), (0, 0)))
    w1m = _weight_to_mat(w1, Cp, Cp)
    w2m = _weight_to_mat(w2, Cp, Cp)
    wdm = _weight_to_mat(wd, Cp, Pp)

    out_full = pl.pallas_call(
        functools.partial(_resblock_ch_kernel, K=K, P=padding, H=H, W=W),
        out_shape=jax.ShapeDtypeStruct((N, Pp, HW), x_nchw.dtype),
        grid_spec=pltpu.PrefetchScalarGridSpec(
            num_scalar_prefetch=0,
            grid=(N,),
            in_specs=[
                pl.BlockSpec((None, Cp, HW), lambda n: (n, 0, 0)),
                pl.BlockSpec((Cp, K * K * Cp), lambda n: (0, 0)),
                pl.BlockSpec((Cp, K * K * Cp), lambda n: (0, 0)),
                pl.BlockSpec((Pp, K * K * Cp), lambda n: (0, 0)),
            ],
            out_specs=pl.BlockSpec((None, Pp, HW), lambda n: (n, 0, 0)),
        ),
        compiler_params=pltpu.CompilerParams(
            dimension_semantics=("parallel",)),
    )(x2d, w1m, w2m, wdm)

    # stride-s conv with 'same' padding == stride-1 conv subsampled at (::s, ::s).
    out = out_full[:, :planes, :].reshape(N, planes, H, W)
    return out[:, :, ::stride, ::stride]


def _reference_forward(x, w1, w2, wd, stride):
    """Pure-JAX reference (lax conv, NCHW) mirroring the PyTorch forward."""
    K = w1.shape[-1]
    P = {3: 1, 5: 2, 7: 3, 9: 4}.get(K, 0)
    dn = lax.conv_dimension_numbers(x.shape, w1.shape, ("NCHW", "OIHW", "NCHW"))
    hp = lax.Precision.HIGHEST
    h = lax.conv_general_dilated(x, w1, (1, 1), [(P, P), (P, P)],
                                 dimension_numbers=dn, precision=hp)
    h = jnp.maximum(h, 0.0)
    h = lax.conv_general_dilated(h, w2, (1, 1), [(P, P), (P, P)],
                                 dimension_numbers=dn, precision=hp)
    h = h + x
    return lax.conv_general_dilated(h, wd, (stride, stride), [(P, P), (P, P)],
                                    dimension_numbers=dn, precision=hp)


if __name__ == "__main__":
    # ResBlock_CH(inplanes=4, planes=8, stride=2, kernel=3); input (N,C,H,W)=(2,4,16,16)
    N, C, H, W, K = 2, 4, 16, 16, 3
    planes, stride = 8, 2

    key = jax.random.PRNGKey(0)
    kx, k1, k2, kd = jax.random.split(key, 4)
    x = jax.random.normal(kx, (N, C, H, W), dtype=jnp.float32)
    # init_weights: Conv2d weights ~ N(0, 0.001), bias=False in this module.
    w1 = 0.001 * jax.random.normal(k1, (C, C, K, K), dtype=jnp.float32)
    w2 = 0.001 * jax.random.normal(k2, (C, C, K, K), dtype=jnp.float32)
    wd = 0.001 * jax.random.normal(kd, (planes, C, K, K), dtype=jnp.float32)

    out = jax.block_until_ready(resblock_ch_forward(x, w1, w2, wd, stride))
    ref = jax.block_until_ready(_reference_forward(x, w1, w2, wd, stride))

    Ho = (H + 2 * 1 - K) // stride + 1
    assert out.shape == ref.shape == (N, planes, Ho, Ho)
    assert jnp.allclose(out, ref, atol=1e-3, rtol=1e-2), "mismatch vs reference"

    print("KERNEL_OK")
</pallas_src>

<mosaic_0001>
module attributes {stable_mosaic.version = 11 : i64} {
  func.func @_resblock_ch_kernel(%arg0: i32, %arg1: memref<1x8x256xf32, #tpu.memory_space<vmem>>, %arg2: memref<8x72xbf16, #tpu.memory_space<vmem>>, %arg3: memref<8x72xbf16, #tpu.memory_space<vmem>>, %arg4: memref<8x72xbf16, #tpu.memory_space<vmem>>, %arg5: memref<1x8x256xf32, #tpu.memory_space<vmem>>) attributes {dimension_semantics = [#tpu.dimension_semantics<parallel>], iteration_bounds = array<i64: 2>, scalar_prefetch = 0 : i64, scratch_operands = 0 : i64, tpu.core_type = #tpu.core_type<tc>, window_params = [{transform_indices = @transform_0, window_bounds = array<i64: 1, 8, 256>}, {pipeline_mode = #tpu.pipeline_mode<synchronous>, transform_indices = @transform_1, window_bounds = array<i64: 8, 72>}, {pipeline_mode = #tpu.pipeline_mode<synchronous>, transform_indices = @transform_2, window_bounds = array<i64: 8, 72>}, {pipeline_mode = #tpu.pipeline_mode<synchronous>, transform_indices = @transform_3, window_bounds = array<i64: 8, 72>}, {transform_indices = @transform_4, window_bounds = array<i64: 1, 8, 256>}]} {
    %c0 = arith.constant 0 : index
    %c0_0 = arith.constant 0 : index
    %c0_1 = arith.constant 0 : index
    %0 = vector.load %arg1[%c0, %c0_0, %c0_1] : memref<1x8x256xf32, #tpu.memory_space<vmem>>, vector<1x8x256xf32>
    %1 = vector.shape_cast %0 : vector<1x8x256xf32> to vector<8x256xf32>
    %2 = tpu.iota {dimensions = array<i32: 1>} : vector<1x256xi32>
    %c4_i32 = arith.constant 4 : i32
    %3 = vector.broadcast %c4_i32 : i32 to vector<1x256xi32>
    %4 = arith.shrsi %2, %3 : vector<1x256xi32>
    %c15_i32 = arith.constant 15 : i32
    %5 = vector.broadcast %c15_i32 : i32 to vector<1x256xi32>
    %6 = arith.andi %2, %5 : vector<1x256xi32>
    %c17_i32 = arith.constant 17 : i32
    %7 = tpu.dynamic_rotate %1 by %c17_i32 dim 1 : vector<8x256xf32>, i32 -> vector<8x256xf32>
    %c-1_i32 = arith.constant -1 : i32
    %8 = vector.broadcast %c-1_i32 : i32 to vector<1x256xi32>
    %9 = arith.addi %4, %8 : vector<1x256xi32>
    %c0_i32 = arith.constant 0 : i32
    %10 = vector.broadcast %c0_i32 : i32 to vector<1x256xi32>
    %11 = arith.cmpi sge, %9, %10 : vector<1x256xi32>
    %c-1_i32_2 = arith.constant -1 : i32
    %12 = vector.broadcast %c-1_i32_2 : i32 to vector<1x256xi32>
    %13 = arith.addi %4, %12 : vector<1x256xi32>
    %c16_i32 = arith.constant 16 : i32
    %14 = vector.broadcast %c16_i32 : i32 to vector<1x256xi32>
    %15 = arith.cmpi slt, %13, %14 : vector<1x256xi32>
    %16 = arith.andi %11, %15 : vector<1x256xi1>
    %c-1_i32_3 = arith.constant -1 : i32
    %17 = vector.broadcast %c-1_i32_3 : i32 to vector<1x256xi32>
    %18 = arith.addi %6, %17 : vector<1x256xi32>
    %c0_i32_4 = arith.constant 0 : i32
    %19 = vector.broadcast %c0_i32_4 : i32 to vector<1x256xi32>
    %20 = arith.cmpi sge, %18, %19 : vector<1x256xi32>
    %21 = arith.andi %16, %20 : vector<1x256xi1>
    %c-1_i32_5 = arith.constant -1 : i32
    %22 = vector.broadcast %c-1_i32_5 : i32 to vector<1x256xi32>
    %23 = arith.addi %6, %22 : vector<1x256xi32>
    %c16_i32_6 = arith.constant 16 : i32
    %24 = vector.broadcast %c16_i32_6 : i32 to vector<1x256xi32>
    %25 = arith.cmpi slt, %23, %24 : vector<1x256xi32>
    %26 = arith.andi %21, %25 : vector<1x256xi1>
    %cst = arith.constant 0.000000e+00 : f32
    %27 = vector.shape_cast %26 : vector<1x256xi1> to vector<1x256xi1>
    %28 = vector.broadcast %27 : vector<1x256xi1> to vector<8x256xi1>
    %29 = vector.broadcast %cst : f32 to vector<8x256xf32>
    %30 = arith.select %28, %7, %29 : vector<8x256xi1>, vector<8x256xf32>
    %c16_i32_7 = arith.constant 16 : i32
    %31 = tpu.dynamic_rotate %1 by %c16_i32_7 dim 1 : vector<8x256xf32>, i32 -> vector<8x256xf32>
    %c-1_i32_8 = arith.constant -1 : i32
    %32 = vector.broadcast %c-1_i32_8 : i32 to vector<1x256xi32>
    %33 = arith.addi %4, %32 : vector<1x256xi32>
    %c0_i32_9 = arith.constant 0 : i32
    %34 = vector.broadcast %c0_i32_9 : i32 to vector<1x256xi32>
    %35 = arith.cmpi sge, %33, %34 : vector<1x256xi32>
    %c-1_i32_10 = arith.constant -1 : i32
    %36 = vector.broadcast %c-1_i32_10 : i32 to vector<1x256xi32>
    %37 = arith.addi %4, %36 : vector<1x256xi32>
    %c16_i32_11 = arith.constant 16 : i32
    %38 = vector.broadcast %c16_i32_11 : i32 to vector<1x256xi32>
    %39 = arith.cmpi slt, %37, %38 : vector<1x256xi32>
    %40 = arith.andi %35, %39 : vector<1x256xi1>
    %c0_i32_12 = arith.constant 0 : i32
    %41 = vector.broadcast %c0_i32_12 : i32 to vector<1x256xi32>
    %42 = arith.addi %6, %41 : vector<1x256xi32>
    %c0_i32_13 = arith.constant 0 : i32
    %43 = vector.broadcast %c0_i32_13 : i32 to vector<1x256xi32>
    %44 = arith.cmpi sge, %42, %43 : vector<1x256xi32>
    %45 = arith.andi %40, %44 : vector<1x256xi1>
    %c0_i32_14 = arith.constant 0 : i32
    %46 = vector.broadcast %c0_i32_14 : i32 to vector<1x256xi32>
    %47 = arith.addi %6, %46 : vector<1x256xi32>
    %c16_i32_15 = arith.constant 16 : i32
    %48 = vector.broadcast %c16_i32_15 : i32 to vector<1x256xi32>
    %49 = arith.cmpi slt, %47, %48 : vector<1x256xi32>
    %50 = arith.andi %45, %49 : vector<1x256xi1>
    %cst_16 = arith.constant 0.000000e+00 : f32
    %51 = vector.shape_cast %50 : vector<1x256xi1> to vector<1x256xi1>
    %52 = vector.broadcast %51 : vector<1x256xi1> to vector<8x256xi1>
    %53 = vector.broadcast %cst_16 : f32 to vector<8x256xf32>
    %54 = arith.select %52, %31, %53 : vector<8x256xi1>, vector<8x256xf32>
    %c15_i32_17 = arith.constant 15 : i32
    %55 = tpu.dynamic_rotate %1 by %c15_i32_17 dim 1 : vector<8x256xf32>, i32 -> vector<8x256xf32>
    %c-1_i32_18 = arith.constant -1 : i32
    %56 = vector.broadcast %c-1_i32_18 : i32 to vector<1x256xi32>
    %57 = arith.addi %4, %56 : vector<1x256xi32>
    %c0_i32_19 = arith.constant 0 : i32
    %58 = vector.broadcast %c0_i32_19 : i32 to vector<1x256xi32>
    %59 = arith.cmpi sge, %57, %58 : vector<1x256xi32>
    %c-1_i32_20 = arith.constant -1 : i32
    %60 = vector.broadcast %c-1_i32_20 : i32 to vector<1x256xi32>
    %61 = arith.addi %4, %60 : vector<1x256xi32>
    %c16_i32_21 = arith.constant 16 : i32
    %62 = vector.broadcast %c16_i32_21 : i32 to vector<1x256xi32>
    %63 = arith.cmpi slt, %61, %62 : vector<1x256xi32>
    %64 = arith.andi %59, %63 : vector<1x256xi1>
    %c1_i32 = arith.constant 1 : i32
    %65 = vector.broadcast %c1_i32 : i32 to vector<1x256xi32>
    %66 = arith.addi %6, %65 : vector<1x256xi32>
    %c0_i32_22 = arith.constant 0 : i32
    %67 = vector.broadcast %c0_i32_22 : i32 to vector<1x256xi32>
    %68 = arith.cmpi sge, %66, %67 : vector<1x256xi32>
    %69 = arith.andi %64, %68 : vector<1x256xi1>
    %c1_i32_23 = arith.constant 1 : i32
    %70 = vector.broadcast %c1_i32_23 : i32 to vector<1x256xi32>
    %71 = arith.addi %6, %70 : vector<1x256xi32>
    %c16_i32_24 = arith.constant 16 : i32
    %72 = vector.broadcast %c16_i32_24 : i32 to vector<1x256xi32>
    %73 = arith.cmpi slt, %71, %72 : vector<1x256xi32>
    %74 = arith.andi %69, %73 : vector<1x256xi1>
    %cst_25 = arith.constant 0.000000e+00 : f32
    %75 = vector.shape_cast %74 : vector<1x256xi1> to vector<1x256xi1>
    %76 = vector.broadcast %75 : vector<1x256xi1> to vector<8x256xi1>
    %77 = vector.broadcast %cst_25 : f32 to vector<8x256xf32>
    %78 = arith.select %76, %55, %77 : vector<8x256xi1>, vector<8x256xf32>
    %c1_i32_26 = arith.constant 1 : i32
    %79 = tpu.dynamic_rotate %1 by %c1_i32_26 dim 1 : vector<8x256xf32>, i32 -> vector<8x256xf32>
    %c0_i32_27 = arith.constant 0 : i32
    %80 = vector.broadcast %c0_i32_27 : i32 to vector<1x256xi32>
    %81 = arith.addi %4, %80 : vector<1x256xi32>
    %c0_i32_28 = arith.constant 0 : i32
    %82 = vector.broadcast %c0_i32_28 : i32 to vector<1x256xi32>
    %83 = arith.cmpi sge, %81, %82 : vector<1x256xi32>
    %c0_i32_29 = arith.constant 0 : i32
    %84 = vector.broadcast %c0_i32_29 : i32 to vector<1x256xi32>
    %85 = arith.addi %4, %84 : vector<1x256xi32>
    %c16_i32_30 = arith.constant 16 : i32
    %86 = vector.broadcast %c16_i32_30 : i32 to vector<1x256xi32>
    %87 = arith.cmpi slt, %85, %86 : vector<1x256xi32>
    %88 = arith.andi %83, %87 : vector<1x256xi1>
    %c-1_i32_31 = arith.constant -1 : i32
    %89 = vector.broadcast %c-1_i32_31 : i32 to vector<1x256xi32>
    %90 = arith.addi %6, %89 : vector<1x256xi32>
    %c0_i32_32 = arith.constant 0 : i32
    %91 = vector.broadcast %c0_i32_32 : i32 to vector<1x256xi32>
    %92 = arith.cmpi sge, %90, %91 : vector<1x256xi32>
    %93 = arith.andi %88, %92 : vector<1x256xi1>
    %c-1_i32_33 = arith.constant -1 : i32
    %94 = vector.broadcast %c-1_i32_33 : i32 to vector<1x256xi32>
    %95 = arith.addi %6, %94 : vector<1x256xi32>
    %c16_i32_34 = arith.constant 16 : i32
    %96 = vector.broadcast %c16_i32_34 : i32 to vector<1x256xi32>
    %97 = arith.cmpi slt, %95, %96 : vector<1x256xi32>
    %98 = arith.andi %93, %97 : vector<1x256xi1>
    %cst_35 = arith.constant 0.000000e+00 : f32
    %99 = vector.shape_cast %98 : vector<1x256xi1> to vector<1x256xi1>
    %100 = vector.broadcast %99 : vector<1x256xi1> to vector<8x256xi1>
    %101 = vector.broadcast %cst_35 : f32 to vector<8x256xf32>
    %102 = arith.select %100, %79, %101 : vector<8x256xi1>, vector<8x256xf32>
    %c255_i32 = arith.constant 255 : i32
    %103 = tpu.dynamic_rotate %1 by %c255_i32 dim 1 : vector<8x256xf32>, i32 -> vector<8x256xf32>
    %c0_i32_36 = arith.constant 0 : i32
    %104 = vector.broadcast %c0_i32_36 : i32 to vector<1x256xi32>
    %105 = arith.addi %4, %104 : vector<1x256xi32>
    %c0_i32_37 = arith.constant 0 : i32
    %106 = vector.broadcast %c0_i32_37 : i32 to vector<1x256xi32>
    %107 = arith.cmpi sge, %105, %106 : vector<1x256xi32>
    %c0_i32_38 = arith.constant 0 : i32
    %108 = vector.broadcast %c0_i32_38 : i32 to vector<1x256xi32>
    %109 = arith.addi %4, %108 : vector<1x256xi32>
    %c16_i32_39 = arith.constant 16 : i32
    %110 = vector.broadcast %c16_i32_39 : i32 to vector<1x256xi32>
    %111 = arith.cmpi slt, %109, %110 : vector<1x256xi32>
    %112 = arith.andi %107, %111 : vector<1x256xi1>
    %c1_i32_40 = arith.constant 1 : i32
    %113 = vector.broadcast %c1_i32_40 : i32 to vector<1x256xi32>
    %114 = arith.addi %6, %113 : vector<1x256xi32>
    %c0_i32_41 = arith.constant 0 : i32
    %115 = vector.broadcast %c0_i32_41 : i32 to vector<1x256xi32>
    %116 = arith.cmpi sge, %114, %115 : vector<1x256xi32>
    %117 = arith.andi %112, %116 : vector<1x256xi1>
    %c1_i32_42 = arith.constant 1 : i32
    %118 = vector.broadcast %c1_i32_42 : i32 to vector<1x256xi32>
    %119 = arith.addi %6, %118 : vector<1x256xi32>
    %c16_i32_43 = arith.constant 16 : i32
    %120 = vector.broadcast %c16_i32_43 : i32 to vector<1x256xi32>
    %121 = arith.cmpi slt, %119, %120 : vector<1x256xi32>
    %122 = arith.andi %117, %121 : vector<1x256xi1>
    %cst_44 = arith.constant 0.000000e+00 : f32
    %123 = vector.shape_cast %122 : vector<1x256xi1> to vector<1x256xi1>
    %124 = vector.broadcast %123 : vector<1x256xi1> to vector<8x256xi1>
    %125 = vector.broadcast %cst_44 : f32 to vector<8x256xf32>
    %126 = arith.select %124, %103, %125 : vector<8x256xi1>, vector<8x256xf32>
    %c241_i32 = arith.constant 241 : i32
    %127 = tpu.dynamic_rotate %1 by %c241_i32 dim 1 : vector<8x256xf32>, i32 -> vector<8x256xf32>
    %c1_i32_45 = arith.constant 1 : i32
    %128 = vector.broadcast %c1_i32_45 : i32 to vector<1x256xi32>
    %129 = arith.addi %4, %128 : vector<1x256xi32>
    %c0_i32_46 = arith.constant 0 : i32
    %130 = vector.broadcast %c0_i32_46 : i32 to vector<1x256xi32>
    %131 = arith.cmpi sge, %129, %130 : vector<1x256xi32>
    %c1_i32_47 = arith.constant 1 : i32
    %132 = vector.broadcast %c1_i32_47 : i32 to vector<1x256xi32>
    %133 = arith.addi %4, %132 : vector<1x256xi32>
    %c16_i32_48 = arith.constant 16 : i32
    %134 = vector.broadcast %c16_i32_48 : i32 to vector<1x256xi32>
    %135 = arith.cmpi slt, %133, %134 : vector<1x256xi32>
    %136 = arith.andi %131, %135 : vector<1x256xi1>
    %c-1_i32_49 = arith.constant -1 : i32
    %137 = vector.broadcast %c-1_i32_49 : i32 to vector<1x256xi32>
    %138 = arith.addi %6, %137 : vector<1x256xi32>
    %c0_i32_50 = arith.constant 0 : i32
    %139 = vector.broadcast %c0_i32_50 : i32 to vector<1x256xi32>
    %140 = arith.cmpi sge, %138, %139 : vector<1x256xi32>
    %141 = arith.andi %136, %140 : vector<1x256xi1>
    %c-1_i32_51 = arith.constant -1 : i32
    %142 = vector.broadcast %c-1_i32_51 : i32 to vector<1x256xi32>
    %143 = arith.addi %6, %142 : vector<1x256xi32>
    %c16_i32_52 = arith.constant 16 : i32
    %144 = vector.broadcast %c16_i32_52 : i32 to vector<1x256xi32>
    %145 = arith.cmpi slt, %143, %144 : vector<1x256xi32>
    %146 = arith.andi %141, %145 : vector<1x256xi1>
    %cst_53 = arith.constant 0.000000e+00 : f32
    %147 = vector.shape_cast %146 : vector<1x256xi1> to vector<1x256xi1>
    %148 = vector.broadcast %147 : vector<1x256xi1> to vector<8x256xi1>
    %149 = vector.broadcast %cst_53 : f32 to vector<8x256xf32>
    %150 = arith.select %148, %127, %149 : vector<8x256xi1>, vector<8x256xf32>
    %c240_i32 = arith.constant 240 : i32
    %151 = tpu.dynamic_rotate %1 by %c240_i32 dim 1 : vector<8x256xf32>, i32 -> vector<8x256xf32>
    %c1_i32_54 = arith.constant 1 : i32
    %152 = vector.broadcast %c1_i32_54 : i32 to vector<1x256xi32>
    %153 = arith.addi %4, %152 : vector<1x256xi32>
    %c0_i32_55 = arith.constant 0 : i32
    %154 = vector.broadcast %c0_i32_55 : i32 to vector<1x256xi32>
    %155 = arith.cmpi sge, %153, %154 : vector<1x256xi32>
    %c1_i32_56 = arith.constant 1 : i32
    %156 = vector.broadcast %c1_i32_56 : i32 to vector<1x256xi32>
    %157 = arith.addi %4, %156 : vector<1x256xi32>
    %c16_i32_57 = arith.constant 16 : i32
    %158 = vector.broadcast %c16_i32_57 : i32 to vector<1x256xi32>
    %159 = arith.cmpi slt, %157, %158 : vector<1x256xi32>
    %160 = arith.andi %155, %159 : vector<1x256xi1>
    %c0_i32_58 = arith.constant 0 : i32
    %161 = vector.broadcast %c0_i32_58 : i32 to vector<1x256xi32>
    %162 = arith.addi %6, %161 : vector<1x256xi32>
    %c0_i32_59 = arith.constant 0 : i32
    %163 = vector.broadcast %c0_i32_59 : i32 to vector<1x256xi32>
    %164 = arith.cmpi sge, %162, %163 : vector<1x256xi32>
    %165 = arith.andi %160, %164 : vector<1x256xi1>
    %c0_i32_60 = arith.constant 0 : i32
    %166 = vector.broadcast %c0_i32_60 : i32 to vector<1x256xi32>
    %167 = arith.addi %6, %166 : vector<1x256xi32>
    %c16_i32_61 = arith.constant 16 : i32
    %168 = vector.broadcast %c16_i32_61 : i32 to vector<1x256xi32>
    %169 = arith.cmpi slt, %167, %168 : vector<1x256xi32>
    %170 = arith.andi %165, %169 : vector<1x256xi1>
    %cst_62 = arith.constant 0.000000e+00 : f32
    %171 = vector.shape_cast %170 : vector<1x256xi1> to vector<1x256xi1>
    %172 = vector.broadcast %171 : vector<1x256xi1> to vector<8x256xi1>
    %173 = vector.broadcast %cst_62 : f32 to vector<8x256xf32>
    %174 = arith.select %172, %151, %173 : vector<8x256xi1>, vector<8x256xf32>
    %c239_i32 = arith.constant 239 : i32
    %175 = tpu.dynamic_rotate %1 by %c239_i32 dim 1 : vector<8x256xf32>, i32 -> vector<8x256xf32>
    %c1_i32_63 = arith.constant 1 : i32
    %176 = vector.broadcast %c1_i32_63 : i32 to vector<1x256xi32>
    %177 = arith.addi %4, %176 : vector<1x256xi32>
    %c0_i32_64 = arith.constant 0 : i32
    %178 = vector.broadcast %c0_i32_64 : i32 to vector<1x256xi32>
    %179 = arith.cmpi sge, %177, %178 : vector<1x256xi32>
    %c1_i32_65 = arith.constant 1 : i32
    %180 = vector.broadcast %c1_i32_65 : i32 to vector<1x256xi32>
    %181 = arith.addi %4, %180 : vector<1x256xi32>
    %c16_i32_66 = arith.constant 16 : i32
    %182 = vector.broadcast %c16_i32_66 : i32 to vector<1x256xi32>
    %183 = arith.cmpi slt, %181, %182 : vector<1x256xi32>
    %184 = arith.andi %179, %183 : vector<1x256xi1>
    %c1_i32_67 = arith.constant 1 : i32
    %185 = vector.broadcast %c1_i32_67 : i32 to vector<1x256xi32>
    %186 = arith.addi %6, %185 : vector<1x256xi32>
    %c0_i32_68 = arith.constant 0 : i32
    %187 = vector.broadcast %c0_i32_68 : i32 to vector<1x256xi32>
    %188 = arith.cmpi sge, %186, %187 : vector<1x256xi32>
    %189 = arith.andi %184, %188 : vector<1x256xi1>
    %c1_i32_69 = arith.constant 1 : i32
    %190 = vector.broadcast %c1_i32_69 : i32 to vector<1x256xi32>
    %191 = arith.addi %6, %190 : vector<1x256xi32>
    %c16_i32_70 = arith.constant 16 : i32
    %192 = vector.broadcast %c16_i32_70 : i32 to vector<1x256xi32>
    %193 = arith.cmpi slt, %191, %192 : vector<1x256xi32>
    %194 = arith.andi %189, %193 : vector<1x256xi1>
    %cst_71 = arith.constant 0.000000e+00 : f32
    %195 = vector.shape_cast %194 : vector<1x256xi1> to vector<1x256xi1>
    %196 = vector.broadcast %195 : vector<1x256xi1> to vector<8x256xi1>
    %197 = vector.broadcast %cst_71 : f32 to vector<8x256xf32>
    %198 = arith.select %196, %175, %197 : vector<8x256xi1>, vector<8x256xf32>
    %199 = tpu.concatenate %30, %54, %78, %102, %1, %126, %150, %174, %198 in 0 : vector<8x256xf32>, vector<8x256xf32>, vector<8x256xf32>, vector<8x256xf32>, vector<8x256xf32>, vector<8x256xf32>, vector<8x256xf32>, vector<8x256xf32>, vector<8x256xf32> -> vector<72x256xf32>
    %200 = arith.truncf %199 : vector<72x256xf32> to vector<72x256xbf16>
    %c0_72 = arith.constant 0 : index
    %c0_73 = arith.constant 0 : index
    %201 = vector.load %arg2[%c0_72, %c0_73] : memref<8x72xbf16, #tpu.memory_space<vmem>>, vector<8x72xbf16>
    %cst_74 = arith.constant dense<0.000000e+00> : vector<8x256xf32>
    %202 = tpu.matmul %201, %200, %cst_74 {dimension_numbers = #tpu.dot_dimension_numbers<[1], [0], [0], [1], [0, 0, 1, 1], [], []>} : vector<8x72xbf16>, vector<72x256xbf16>, vector<8x256xf32> -> vector<8x256xf32>
    %cst_75 = arith.constant 0.000000e+00 : f32
    %203 = vector.broadcast %cst_75 : f32 to vector<8x256xf32>
    %204 = arith.maximumf %202, %203 : vector<8x256xf32>
    %205 = tpu.iota {dimensions = array<i32: 1>} : vector<1x256xi32>
    %c4_i32_76 = arith.constant 4 : i32
    %206 = vector.broadcast %c4_i32_76 : i32 to vector<1x256xi32>
    %207 = arith.shrsi %205, %206 : vector<1x256xi32>
    %c15_i32_77 = arith.constant 15 : i32
    %208 = vector.broadcast %c15_i32_77 : i32 to vector<1x256xi32>
    %209 = arith.andi %205, %208 : vector<1x256xi32>
    %c17_i32_78 = arith.constant 17 : i32
    %210 = tpu.dynamic_rotate %204 by %c17_i32_78 dim 1 : vector<8x256xf32>, i32 -> vector<8x256xf32>
    %c-1_i32_79 = arith.constant -1 : i32
    %211 = vector.broadcast %c-1_i32_79 : i32 to vector<1x256xi32>
    %212 = arith.addi %207, %211 : vector<1x256xi32>
    %c0_i32_80 = arith.constant 0 : i32
    %213 = vector.broadcast %c0_i32_80 : i32 to vector<1x256xi32>
    %214 = arith.cmpi sge, %212, %213 : vector<1x256xi32>
    %c-1_i32_81 = arith.constant -1 : i32
    %215 = vector.broadcast %c-1_i32_81 : i32 to vector<1x256xi32>
    %216 = arith.addi %207, %215 : vector<1x256xi32>
    %c16_i32_82 = arith.constant 16 : i32
    %217 = vector.broadcast %c16_i32_82 : i32 to vector<1x256xi32>
    %218 = arith.cmpi slt, %216, %217 : vector<1x256xi32>
    %219 = arith.andi %214, %218 : vector<1x256xi1>
    %c-1_i32_83 = arith.constant -1 : i32
    %220 = vector.broadcast %c-1_i32_83 : i32 to vector<1x256xi32>
    %221 = arith.addi %209, %220 : vector<1x256xi32>
    %c0_i32_84 = arith.constant 0 : i32
    %222 = vector.broadcast %c0_i32_84 : i32 to vector<1x256xi32>
    %223 = arith.cmpi sge, %221, %222 : vector<1x256xi32>
    %224 = arith.andi %219, %223 : vector<1x256xi1>
    %c-1_i32_85 = arith.constant -1 : i32
    %225 = vector.broadcast %c-1_i32_85 : i32 to vector<1x256xi32>
    %226 = arith.addi %209, %225 : vector<1x256xi32>
    %c16_i32_86 = arith.constant 16 : i32
    %227 = vector.broadcast %c16_i32_86 : i32 to vector<1x256xi32>
    %228 = arith.cmpi slt, %226, %227 : vector<1x256xi32>
    %229 = arith.andi %224, %228 : vector<1x256xi1>
    %cst_87 = arith.constant 0.000000e+00 : f32
    %230 = vector.shape_cast %229 : vector<1x256xi1> to vector<1x256xi1>
    %231 = vector.broadcast %230 : vector<1x256xi1> to vector<8x256xi1>
    %232 = vector.broadcast %cst_87 : f32 to vector<8x256xf32>
    %233 = arith.select %231, %210, %232 : vector<8x256xi1>, vector<8x256xf32>
    %c16_i32_88 = arith.constant 16 : i32
    %234 = tpu.dynamic_rotate %204 by %c16_i32_88 dim 1 : vector<8x256xf32>, i32 -> vector<8x256xf32>
    %c-1_i32_89 = arith.constant -1 : i32
    %235 = vector.broadcast %c-1_i32_89 : i32 to vector<1x256xi32>
    %236 = arith.addi %207, %235 : vector<1x256xi32>
    %c0_i32_90 = arith.constant 0 : i32
    %237 = vector.broadcast %c0_i32_90 : i32 to vector<1x256xi32>
    %238 = arith.cmpi sge, %236, %237 : vector<1x256xi32>
    %c-1_i32_91 = arith.constant -1 : i32
    %239 = vector.broadcast %c-1_i32_91 : i32 to vector<1x256xi32>
    %240 = arith.addi %207, %239 : vector<1x256xi32>
    %c16_i32_92 = arith.constant 16 : i32
    %241 = vector.broadcast %c16_i32_92 : i32 to vector<1x256xi32>
    %242 = arith.cmpi slt, %240, %241 : vector<1x256xi32>
    %243 = arith.andi %238, %242 : vector<1x256xi1>
    %c0_i32_93 = arith.constant 0 : i32
    %244 = vector.broadcast %c0_i32_93 : i32 to vector<1x256xi32>
    %245 = arith.addi %209, %244 : vector<1x256xi32>
    %c0_i32_94 = arith.constant 0 : i32
    %246 = vector.broadcast %c0_i32_94 : i32 to vector<1x256xi32>
    %247 = arith.cmpi sge, %245, %246 : vector<1x256xi32>
    %248 = arith.andi %243, %247 : vector<1x256xi1>
    %c0_i32_95 = arith.constant 0 : i32
    %249 = vector.broadcast %c0_i32_95 : i32 to vector<1x256xi32>
    %250 = arith.addi %209, %249 : vector<1x256xi32>
    %c16_i32_96 = arith.constant 16 : i32
    %251 = vector.broadcast %c16_i32_96 : i32 to vector<1x256xi32>
    %252 = arith.cmpi slt, %250, %251 : vector<1x256xi32>
    %253 = arith.andi %248, %252 : vector<1x256xi1>
    %cst_97 = arith.constant 0.000000e+00 : f32
    %254 = vector.shape_cast %253 : vector<1x256xi1> to vector<1x256xi1>
    %255 = vector.broadcast %254 : vector<1x256xi1> to vector<8x256xi1>
    %256 = vector.broadcast %cst_97 : f32 to vector<8x256xf32>
    %257 = arith.select %255, %234, %256 : vector<8x256xi1>, vector<8x256xf32>
    %c15_i32_98 = arith.constant 15 : i32
    %258 = tpu.dynamic_rotate %204 by %c15_i32_98 dim 1 : vector<8x256xf32>, i32 -> vector<8x256xf32>
    %c-1_i32_99 = arith.constant -1 : i32
    %259 = vector.broadcast %c-1_i32_99 : i32 to vector<1x256xi32>
    %260 = arith.addi %207, %259 : vector<1x256xi32>
    %c0_i32_100 = arith.constant 0 : i32
    %261 = vector.broadcast %c0_i32_100 : i32 to vector<1x256xi32>
    %262 = arith.cmpi sge, %260, %261 : vector<1x256xi32>
    %c-1_i32_101 = arith.constant -1 : i32
    %263 = vector.broadcast %c-1_i32_101 : i32 to vector<1x256xi32>
    %264 = arith.addi %207, %263 : vector<1x256xi32>
    %c16_i32_102 = arith.constant 16 : i32
    %265 = vector.broadcast %c16_i32_102 : i32 to vector<1x256xi32>
    %266 = arith.cmpi slt, %264, %265 : vector<1x256xi32>
    %267 = arith.andi %262, %266 : vector<1x256xi1>
    %c1_i32_103 = arith.constant 1 : i32
    %268 = vector.broadcast %c1_i32_103 : i32 to vector<1x256xi32>
    %269 = arith.addi %209, %268 : vector<1x256xi32>
    %c0_i32_104 = arith.constant 0 : i32
    %270 = vector.broadcast %c0_i32_104 : i32 to vector<1x256xi32>
    %271 = arith.cmpi sge, %269, %270 : vector<1x256xi32>
    %272 = arith.andi %267, %271 : vector<1x256xi1>
    %c1_i32_105 = arith.constant 1 : i32
    %273 = vector.broadcast %c1_i32_105 : i32 to vector<1x256xi32>
    %274 = arith.addi %209, %273 : vector<1x256xi32>
    %c16_i32_106 = arith.constant 16 : i32
    %275 = vector.broadcast %c16_i32_106 : i32 to vector<1x256xi32>
    %276 = arith.cmpi slt, %274, %275 : vector<1x256xi32>
    %277 = arith.andi %272, %276 : vector<1x256xi1>
    %cst_107 = arith.constant 0.000000e+00 : f32
    %278 = vector.shape_cast %277 : vector<1x256xi1> to vector<1x256xi1>
    %279 = vector.broadcast %278 : vector<1x256xi1> to vector<8x256xi1>
    %280 = vector.broadcast %cst_107 : f32 to vector<8x256xf32>
    %281 = arith.select %279, %258, %280 : vector<8x256xi1>, vector<8x256xf32>
    %c1_i32_108 = arith.constant 1 : i32
    %282 = tpu.dynamic_rotate %204 by %c1_i32_108 dim 1 : vector<8x256xf32>, i32 -> vector<8x256xf32>
    %c0_i32_109 = arith.constant 0 : i32
    %283 = vector.broadcast %c0_i32_109 : i32 to vector<1x256xi32>
    %284 = arith.addi %207, %283 : vector<1x256xi32>
    %c0_i32_110 = arith.constant 0 : i32
    %285 = vector.broadcast %c0_i32_110 : i32 to vector<1x256xi32>
    %286 = arith.cmpi sge, %284, %285 : vector<1x256xi32>
    %c0_i32_111 = arith.constant 0 : i32
    %287 = vector.broadcast %c0_i32_111 : i32 to vector<1x256xi32>
    %288 = arith.addi %207, %287 : vector<1x256xi32>
    %c16_i32_112 = arith.constant 16 : i32
    %289 = vector.broadcast %c16_i32_112 : i32 to vector<1x256xi32>
    %290 = arith.cmpi slt, %288, %289 : vector<1x256xi32>
    %291 = arith.andi %286, %290 : vector<1x256xi1>
    %c-1_i32_113 = arith.constant -1 : i32
    %292 = vector.broadcast %c-1_i32_113 : i32 to vector<1x256xi32>
    %293 = arith.addi %209, %292 : vector<1x256xi32>
    %c0_i32_114 = arith.constant 0 : i32
    %294 = vector.broadcast %c0_i32_114 : i32 to vector<1x256xi32>
    %295 = arith.cmpi sge, %293, %294 : vector<1x256xi32>
    %296 = arith.andi %291, %295 : vector<1x256xi1>
    %c-1_i32_115 = arith.constant -1 : i32
    %297 = vector.broadcast %c-1_i32_115 : i32 to vector<1x256xi32>
    %298 = arith.addi %209, %297 : vector<1x256xi32>
    %c16_i32_116 = arith.constant 16 : i32
    %299 = vector.broadcast %c16_i32_116 : i32 to vector<1x256xi32>
    %300 = arith.cmpi slt, %298, %299 : vector<1x256xi32>
    %301 = arith.andi %296, %300 : vector<1x256xi1>
    %cst_117 = arith.constant 0.000000e+00 : f32
    %302 = vector.shape_cast %301 : vector<1x256xi1> to vector<1x256xi1>
    %303 = vector.broadcast %302 : vector<1x256xi1> to vector<8x256xi1>
    %304 = vector.broadcast %cst_117 : f32 to vector<8x256xf32>
    %305 = arith.select %303, %282, %304 : vector<8x256xi1>, vector<8x256xf32>
    %c255_i32_118 = arith.constant 255 : i32
    %306 = tpu.dynamic_rotate %204 by %c255_i32_118 dim 1 : vector<8x256xf32>, i32 -> vector<8x256xf32>
    %c0_i32_119 = arith.constant 0 : i32
    %307 = vector.broadcast %c0_i32_119 : i32 to vector<1x256xi32>
    %308 = arith.addi %207, %307 : vector<1x256xi32>
    %c0_i32_120 = arith.constant 0 : i32
    %309 = vector.broadcast %c0_i32_120 : i32 to vector<1x256xi32>
    %310 = arith.cmpi sge, %308, %309 : vector<1x256xi32>
    %c0_i32_121 = arith.constant 0 : i32
    %311 = vector.broadcast %c0_i32_121 : i32 to vector<1x256xi32>
    %312 = arith.addi %207, %311 : vector<1x256xi32>
    %c16_i32_122 = arith.constant 16 : i32
    %313 = vector.broadcast %c16_i32_122 : i32 to vector<1x256xi32>
    %314 = arith.cmpi slt, %312, %313 : vector<1x256xi32>
    %315 = arith.andi %310, %314 : vector<1x256xi1>
    %c1_i32_123 = arith.constant 1 : i32
    %316 = vector.broadcast %c1_i32_123 : i32 to vector<1x256xi32>
    %317 = arith.addi %209, %316 : vector<1x256xi32>
    %c0_i32_124 = arith.constant 0 : i32
    %318 = vector.broadcast %c0_i32_124 : i32 to vector<1x256xi32>
    %319 = arith.cmpi sge, %317, %318 : vector<1x256xi32>
    %320 = arith.andi %315, %319 : vector<1x256xi1>
    %c1_i32_125 = arith.constant 1 : i32
    %321 = vector.broadcast %c1_i32_125 : i32 to vector<1x256xi32>
    %322 = arith.addi %209, %321 : vector<1x256xi32>
    %c16_i32_126 = arith.constant 16 : i32
    %323 = vector.broadcast %c16_i32_126 : i32 to vector<1x256xi32>
    %324 = arith.cmpi slt, %322, %323 : vector<1x256xi32>
    %325 = arith.andi %320, %324 : vector<1x256xi1>
    %cst_127 = arith.constant 0.000000e+00 : f32
    %326 = vector.shape_cast %325 : vector<1x256xi1> to vector<1x256xi1>
    %327 = vector.broadcast %326 : vector<1x256xi1> to vector<8x256xi1>
    %328 = vector.broadcast %cst_127 : f32 to vector<8x256xf32>
    %329 = arith.select %327, %306, %328 : vector<8x256xi1>, vector<8x256xf32>
    %c241_i32_128 = arith.constant 241 : i32
    %330 = tpu.dynamic_rotate %204 by %c241_i32_128 dim 1 : vector<8x256xf32>, i32 -> vector<8x256xf32>
    %c1_i32_129 = arith.constant 1 : i32
    %331 = vector.broadcast %c1_i32_129 : i32 to vector<1x256xi32>
    %332 = arith.addi %207, %331 : vector<1x256xi32>
    %c0_i32_130 = arith.constant 0 : i32
    %333 = vector.broadcast %c0_i32_130 : i32 to vector<1x256xi32>
    %334 = arith.cmpi sge, %332, %333 : vector<1x256xi32>
    %c1_i32_131 = arith.constant 1 : i32
    %335 = vector.broadcast %c1_i32_131 : i32 to vector<1x256xi32>
    %336 = arith.addi %207, %335 : vector<1x256xi32>
    %c16_i32_132 = arith.constant 16 : i32
    %337 = vector.broadcast %c16_i32_132 : i32 to vector<1x256xi32>
    %338 = arith.cmpi slt, %336, %337 : vector<1x256xi32>
    %339 = arith.andi %334, %338 : vector<1x256xi1>
    %c-1_i32_133 = arith.constant -1 : i32
    %340 = vector.broadcast %c-1_i32_133 : i32 to vector<1x256xi32>
    %341 = arith.addi %209, %340 : vector<1x256xi32>
    %c0_i32_134 = arith.constant 0 : i32
    %342 = vector.broadcast %c0_i32_134 : i32 to vector<1x256xi32>
    %343 = arith.cmpi sge, %341, %342 : vector<1x256xi32>
    %344 = arith.andi %339, %343 : vector<1x256xi1>
    %c-1_i32_135 = arith.constant -1 : i32
    %345 = vector.broadcast %c-1_i32_135 : i32 to vector<1x256xi32>
    %346 = arith.addi %209, %345 : vector<1x256xi32>
    %c16_i32_136 = arith.constant 16 : i32
    %347 = vector.broadcast %c16_i32_136 : i32 to vector<1x256xi32>
    %348 = arith.cmpi slt, %346, %347 : vector<1x256xi32>
    %349 = arith.andi %344, %348 : vector<1x256xi1>
    %cst_137 = arith.constant 0.000000e+00 : f32
    %350 = vector.shape_cast %349 : vector<1x256xi1> to vector<1x256xi1>
    %351 = vector.broadcast %350 : vector<1x256xi1> to vector<8x256xi1>
    %352 = vector.broadcast %cst_137 : f32 to vector<8x256xf32>
    %353 = arith.select %351, %330, %352 : vector<8x256xi1>, vector<8x256xf32>
    %c240_i32_138 = arith.constant 240 : i32
    %354 = tpu.dynamic_rotate %204 by %c240_i32_138 dim 1 : vector<8x256xf32>, i32 -> vector<8x256xf32>
    %c1_i32_139 = arith.constant 1 : i32
    %355 = vector.broadcast %c1_i32_139 : i32 to vector<1x256xi32>
    %356 = arith.addi %207, %355 : vector<1x256xi32>
    %c0_i32_140 = arith.constant 0 : i32
    %357 = vector.broadcast %c0_i32_140 : i32 to vector<1x256xi32>
    %358 = arith.cmpi sge, %356, %357 : vector<1x256xi32>
    %c1_i32_141 = arith.constant 1 : i32
    %359 = vector.broadcast %c1_i32_141 : i32 to vector<1x256xi32>
    %360 = arith.addi %207, %359 : vector<1x256xi32>
    %c16_i32_142 = arith.constant 16 : i32
    %361 = vector.broadcast %c16_i32_142 : i32 to vector<1x256xi32>
    %362 = arith.cmpi slt, %360, %361 : vector<1x256xi32>
    %363 = arith.andi %358, %362 : vector<1x256xi1>
    %c0_i32_143 = arith.constant 0 : i32
    %364 = vector.broadcast %c0_i32_143 : i32 to vector<1x256xi32>
    %365 = arith.addi %209, %364 : vector<1x256xi32>
    %c0_i32_144 = arith.constant 0 : i32
    %366 = vector.broadcast %c0_i32_144 : i32 to vector<1x256xi32>
    %367 = arith.cmpi sge, %365, %366 : vector<1x256xi32>
    %368 = arith.andi %363, %367 : vector<1x256xi1>
    %c0_i32_145 = arith.constant 0 : i32
    %369 = vector.broadcast %c0_i32_145 : i32 to vector<1x256xi32>
    %370 = arith.addi %209, %369 : vector<1x256xi32>
    %c16_i32_146 = arith.constant 16 : i32
    %371 = vector.broadcast %c16_i32_146 : i32 to vector<1x256xi32>
    %372 = arith.cmpi slt, %370, %371 : vector<1x256xi32>
    %373 = arith.andi %368, %372 : vector<1x256xi1>
    %cst_147 = arith.constant 0.000000e+00 : f32
    %374 = vector.shape_cast %373 : vector<1x256xi1> to vector<1x256xi1>
    %375 = vector.broadcast %374 : vector<1x256xi1> to vector<8x256xi1>
    %376 = vector.broadcast %cst_147 : f32 to vector<8x256xf32>
    %377 = arith.select %375, %354, %376 : vector<8x256xi1>, vector<8x256xf32>
    %c239_i32_148 = arith.constant 239 : i32
    %378 = tpu.dynamic_rotate %204 by %c239_i32_148 dim 1 : vector<8x256xf32>, i32 -> vector<8x256xf32>
    %c1_i32_149 = arith.constant 1 : i32
    %379 = vector.broadcast %c1_i32_149 : i32 to vector<1x256xi32>
    %380 = arith.addi %207, %379 : vector<1x256xi32>
    %c0_i32_150 = arith.constant 0 : i32
    %381 = vector.broadcast %c0_i32_150 : i32 to vector<1x256xi32>
    %382 = arith.cmpi sge, %380, %381 : vector<1x256xi32>
    %c1_i32_151 = arith.constant 1 : i32
    %383 = vector.broadcast %c1_i32_151 : i32 to vector<1x256xi32>
    %384 = arith.addi %207, %383 : vector<1x256xi32>
    %c16_i32_152 = arith.constant 16 : i32
    %385 = vector.broadcast %c16_i32_152 : i32 to vector<1x256xi32>
    %386 = arith.cmpi slt, %384, %385 : vector<1x256xi32>
    %387 = arith.andi %382, %386 : vector<1x256xi1>
    %c1_i32_153 = arith.constant 1 : i32
    %388 = vector.broadcast %c1_i32_153 : i32 to vector<1x256xi32>
    %389 = arith.addi %209, %388 : vector<1x256xi32>
    %c0_i32_154 = arith.constant 0 : i32
    %390 = vector.broadcast %c0_i32_154 : i32 to vector<1x256xi32>
    %391 = arith.cmpi sge, %389, %390 : vector<1x256xi32>
    %392 = arith.andi %387, %391 : vector<1x256xi1>
    %c1_i32_155 = arith.constant 1 : i32
    %393 = vector.broadcast %c1_i32_155 : i32 to vector<1x256xi32>
    %394 = arith.addi %209, %393 : vector<1x256xi32>
    %c16_i32_156 = arith.constant 16 : i32
    %395 = vector.broadcast %c16_i32_156 : i32 to vector<1x256xi32>
    %396 = arith.cmpi slt, %394, %395 : vector<1x256xi32>
    %397 = arith.andi %392, %396 : vector<1x256xi1>
    %cst_157 = arith.constant 0.000000e+00 : f32
    %398 = vector.shape_cast %397 : vector<1x256xi1> to vector<1x256xi1>
    %399 = vector.broadcast %398 : vector<1x256xi1> to vector<8x256xi1>
    %400 = vector.broadcast %cst_157 : f32 to vector<8x256xf32>
    %401 = arith.select %399, %378, %400 : vector<8x256xi1>, vector<8x256xf32>
    %402 = tpu.concatenate %233, %257, %281, %305, %204, %329, %353, %377, %401 in 0 : vector<8x256xf32>, vector<8x256xf32>, vector<8x256xf32>, vector<8x256xf32>, vector<8x256xf32>, vector<8x256xf32>, vector<8x256xf32>, vector<8x256xf32>, vector<8x256xf32> -> vector<72x256xf32>
    %403 = arith.truncf %402 : vector<72x256xf32> to vector<72x256xbf16>
    %c0_158 = arith.constant 0 : index
    %c0_159 = arith.constant 0 : index
    %404 = vector.load %arg3[%c0_158, %c0_159] : memref<8x72xbf16, #tpu.memory_space<vmem>>, vector<8x72xbf16>
    %cst_160 = arith.constant dense<0.000000e+00> : vector<8x256xf32>
    %405 = tpu.matmul %404, %403, %cst_160 {dimension_numbers = #tpu.dot_dimension_numbers<[1], [0], [0], [1], [0, 0, 1, 1], [], []>} : vector<8x72xbf16>, vector<72x256xbf16>, vector<8x256xf32> -> vector<8x256xf32>
    %406 = arith.addf %405, %1 : vector<8x256xf32>
    %407 = tpu.iota {dimensions = array<i32: 1>} : vector<1x256xi32>
    %c4_i32_161 = arith.constant 4 : i32
    %408 = vector.broadcast %c4_i32_161 : i32 to vector<1x256xi32>
    %409 = arith.shrsi %407, %408 : vector<1x256xi32>
    %c15_i32_162 = arith.constant 15 : i32
    %410 = vector.broadcast %c15_i32_162 : i32 to vector<1x256xi32>
    %411 = arith.andi %407, %410 : vector<1x256xi32>
    %c17_i32_163 = arith.constant 17 : i32
    %412 = tpu.dynamic_rotate %406 by %c17_i32_163 dim 1 : vector<8x256xf32>, i32 -> vector<8x256xf32>
    %c-1_i32_164 = arith.constant -1 : i32
    %413 = vector.broadcast %c-1_i32_164 : i32 to vector<1x256xi32>
    %414 = arith.addi %409, %413 : vector<1x256xi32>
    %c0_i32_165 = arith.constant 0 : i32
    %415 = vector.broadcast %c0_i32_165 : i32 to vector<1x256xi32>
    %416 = arith.cmpi sge, %414, %415 : vector<1x256xi32>
    %c-1_i32_166 = arith.constant -1 : i32
    %417 = vector.broadcast %c-1_i32_166 : i32 to vector<1x256xi32>
    %418 = arith.addi %409, %417 : vector<1x256xi32>
    %c16_i32_167 = arith.constant 16 : i32
    %419 = vector.broadcast %c16_i32_167 : i32 to vector<1x256xi32>
    %420 = arith.cmpi slt, %418, %419 : vector<1x256xi32>
    %421 = arith.andi %416, %420 : vector<1x256xi1>
    %c-1_i32_168 = arith.constant -1 : i32
    %422 = vector.broadcast %c-1_i32_168 : i32 to vector<1x256xi32>
    %423 = arith.addi %411, %422 : vector<1x256xi32>
    %c0_i32_169 = arith.constant 0 : i32
    %424 = vector.broadcast %c0_i32_169 : i32 to vector<1x256xi32>
    %425 = arith.cmpi sge, %423, %424 : vector<1x256xi32>
    %426 = arith.andi %421, %425 : vector<1x256xi1>
    %c-1_i32_170 = arith.constant -1 : i32
    %427 = vector.broadcast %c-1_i32_170 : i32 to vector<1x256xi32>
    %428 = arith.addi %411, %427 : vector<1x256xi32>
    %c16_i32_171 = arith.constant 16 : i32
    %429 = vector.broadcast %c16_i32_171 : i32 to vector<1x256xi32>
    %430 = arith.cmpi slt, %428, %429 : vector<1x256xi32>
    %431 = arith.andi %426, %430 : vector<1x256xi1>
    %cst_172 = arith.constant 0.000000e+00 : f32
    %432 = vector.shape_cast %431 : vector<1x256xi1> to vector<1x256xi1>
    %433 = vector.broadcast %432 : vector<1x256xi1> to vector<8x256xi1>
    %434 = vector.broadcast %cst_172 : f32 to vector<8x256xf32>
    %435 = arith.select %433, %412, %434 : vector<8x256xi1>, vector<8x256xf32>
    %c16_i32_173 = arith.constant 16 : i32
    %436 = tpu.dynamic_rotate %406 by %c16_i32_173 dim 1 : vector<8x256xf32>, i32 -> vector<8x256xf32>
    %c-1_i32_174 = arith.constant -1 : i32
    %437 = vector.broadcast %c-1_i32_174 : i32 to vector<1x256xi32>
    %438 = arith.addi %409, %437 : vector<1x256xi32>
    %c0_i32_175 = arith.constant 0 : i32
    %439 = vector.broadcast %c0_i32_175 : i32 to vector<1x256xi32>
    %440 = arith.cmpi sge, %438, %439 : vector<1x256xi32>
    %c-1_i32_176 = arith.constant -1 : i32
    %441 = vector.broadcast %c-1_i32_176 : i32 to vector<1x256xi32>
    %442 = arith.addi %409, %441 : vector<1x256xi32>
    %c16_i32_177 = arith.constant 16 : i32
    %443 = vector.broadcast %c16_i32_177 : i32 to vector<1x256xi32>
    %444 = arith.cmpi slt, %442, %443 : vector<1x256xi32>
    %445 = arith.andi %440, %444 : vector<1x256xi1>
    %c0_i32_178 = arith.constant 0 : i32
    %446 = vector.broadcast %c0_i32_178 : i32 to vector<1x256xi32>
    %447 = arith.addi %411, %446 : vector<1x256xi32>
    %c0_i32_179 = arith.constant 0 : i32
    %448 = vector.broadcast %c0_i32_179 : i32 to vector<1x256xi32>
    %449 = arith.cmpi sge, %447, %448 : vector<1x256xi32>
    %450 = arith.andi %445, %449 : vector<1x256xi1>
    %c0_i32_180 = arith.constant 0 : i32
    %451 = vector.broadcast %c0_i32_180 : i32 to vector<1x256xi32>
    %452 = arith.addi %411, %451 : vector<1x256xi32>
    %c16_i32_181 = arith.constant 16 : i32
    %453 = vector.broadcast %c16_i32_181 : i32 to vector<1x256xi32>
    %454 = arith.cmpi slt, %452, %453 : vector<1x256xi32>
    %455 = arith.andi %450, %454 : vector<1x256xi1>
    %cst_182 = arith.constant 0.000000e+00 : f32
    %456 = vector.shape_cast %455 : vector<1x256xi1> to vector<1x256xi1>
    %457 = vector.broadcast %456 : vector<1x256xi1> to vector<8x256xi1>
    %458 = vector.broadcast %cst_182 : f32 to vector<8x256xf32>
    %459 = arith.select %457, %436, %458 : vector<8x256xi1>, vector<8x256xf32>
    %c15_i32_183 = arith.constant 15 : i32
    %460 = tpu.dynamic_rotate %406 by %c15_i32_183 dim 1 : vector<8x256xf32>, i32 -> vector<8x256xf32>
    %c-1_i32_184 = arith.constant -1 : i32
    %461 = vector.broadcast %c-1_i32_184 : i32 to vector<1x256xi32>
    %462 = arith.addi %409, %461 : vector<1x256xi32>
    %c0_i32_185 = arith.constant 0 : i32
    %463 = vector.broadcast %c0_i32_185 : i32 to vector<1x256xi32>
    %464 = arith.cmpi sge, %462, %463 : vector<1x256xi32>
    %c-1_i32_186 = arith.constant -1 : i32
    %465 = vector.broadcast %c-1_i32_186 : i32 to vector<1x256xi32>
    %466 = arith.addi %409, %465 : vector<1x256xi32>
    %c16_i32_187 = arith.constant 16 : i32
    %467 = vector.broadcast %c16_i32_187 : i32 to vector<1x256xi32>
    %468 = arith.cmpi slt, %466, %467 : vector<1x256xi32>
    %469 = arith.andi %464, %468 : vector<1x256xi1>
    %c1_i32_188 = arith.constant 1 : i32
    %470 = vector.broadcast %c1_i32_188 : i32 to vector<1x256xi32>
    %471 = arith.addi %411, %470 : vector<1x256xi32>
    %c0_i32_189 = arith.constant 0 : i32
    %472 = vector.broadcast %c0_i32_189 : i32 to vector<1x256xi32>
    %473 = arith.cmpi sge, %471, %472 : vector<1x256xi32>
    %474 = arith.andi %469, %473 : vector<1x256xi1>
    %c1_i32_190 = arith.constant 1 : i32
    %475 = vector.broadcast %c1_i32_190 : i32 to vector<1x256xi32>
    %476 = arith.addi %411, %475 : vector<1x256xi32>
    %c16_i32_191 = arith.constant 16 : i32
    %477 = vector.broadcast %c16_i32_191 : i32 to vector<1x256xi32>
    %478 = arith.cmpi slt, %476, %477 : vector<1x256xi32>
    %479 = arith.andi %474, %478 : vector<1x256xi1>
    %cst_192 = arith.constant 0.000000e+00 : f32
    %480 = vector.shape_cast %479 : vector<1x256xi1> to vector<1x256xi1>
    %481 = vector.broadcast %480 : vector<1x256xi1> to vector<8x256xi1>
    %482 = vector.broadcast %cst_192 : f32 to vector<8x256xf32>
    %483 = arith.select %481, %460, %482 : vector<8x256xi1>, vector<8x256xf32>
    %c1_i32_193 = arith.constant 1 : i32
    %484 = tpu.dynamic_rotate %406 by %c1_i32_193 dim 1 : vector<8x256xf32>, i32 -> vector<8x256xf32>
    %c0_i32_194 = arith.constant 0 : i32
    %485 = vector.broadcast %c0_i32_194 : i32 to vector<1x256xi32>
    %486 = arith.addi %409, %485 : vector<1x256xi32>
    %c0_i32_195 = arith.constant 0 : i32
    %487 = vector.broadcast %c0_i32_195 : i32 to vector<1x256xi32>
    %488 = arith.cmpi sge, %486, %487 : vector<1x256xi32>
    %c0_i32_196 = arith.constant 0 : i32
    %489 = vector.broadcast %c0_i32_196 : i32 to vector<1x256xi32>
    %490 = arith.addi %409, %489 : vector<1x256xi32>
    %c16_i32_197 = arith.constant 16 : i32
    %491 = vector.broadcast %c16_i32_197 : i32 to vector<1x256xi32>
    %492 = arith.cmpi slt, %490, %491 : vector<1x256xi32>
    %493 = arith.andi %488, %492 : vector<1x256xi1>
    %c-1_i32_198 = arith.constant -1 : i32
    %494 = vector.broadcast %c-1_i32_198 : i32 to vector<1x256xi32>
    %495 = arith.addi %411, %494 : vector<1x256xi32>
    %c0_i32_199 = arith.constant 0 : i32
    %496 = vector.broadcast %c0_i32_199 : i32 to vector<1x256xi32>
    %497 = arith.cmpi sge, %495, %496 : vector<1x256xi32>
    %498 = arith.andi %493, %497 : vector<1x256xi1>
    %c-1_i32_200 = arith.constant -1 : i32
    %499 = vector.broadcast %c-1_i32_200 : i32 to vector<1x256xi32>
    %500 = arith.addi %411, %499 : vector<1x256xi32>
    %c16_i32_201 = arith.constant 16 : i32
    %501 = vector.broadcast %c16_i32_201 : i32 to vector<1x256xi32>
    %502 = arith.cmpi slt, %500, %501 : vector<1x256xi32>
    %503 = arith.andi %498, %502 : vector<1x256xi1>
    %cst_202 = arith.constant 0.000000e+00 : f32
    %504 = vector.shape_cast %503 : vector<1x256xi1> to vector<1x256xi1>
    %505 = vector.broadcast %504 : vector<1x256xi1> to vector<8x256xi1>
    %506 = vector.broadcast %cst_202 : f32 to vector<8x256xf32>
    %507 = arith.select %505, %484, %506 : vector<8x256xi1>, vector<8x256xf32>
    %c255_i32_203 = arith.constant 255 : i32
    %508 = tpu.dynamic_rotate %406 by %c255_i32_203 dim 1 : vector<8x256xf32>, i32 -> vector<8x256xf32>
    %c0_i32_204 = arith.constant 0 : i32
    %509 = vector.broadcast %c0_i32_204 : i32 to vector<1x256xi32>
    %510 = arith.addi %409, %509 : vector<1x256xi32>
    %c0_i32_205 = arith.constant 0 : i32
    %511 = vector.broadcast %c0_i32_205 : i32 to vector<1x256xi32>
    %512 = arith.cmpi sge, %510, %511 : vector<1x256xi32>
    %c0_i32_206 = arith.constant 0 : i32
    %513 = vector.broadcast %c0_i32_206 : i32 to vector<1x256xi32>
    %514 = arith.addi %409, %513 : vector<1x256xi32>
    %c16_i32_207 = arith.constant 16 : i32
    %515 = vector.broadcast %c16_i32_207 : i32 to vector<1x256xi32>
    %516 = arith.cmpi slt, %514, %515 : vector<1x256xi32>
    %517 = arith.andi %512, %516 : vector<1x256xi1>
    %c1_i32_208 = arith.constant 1 : i32
    %518 = vector.broadcast %c1_i32_208 : i32 to vector<1x256xi32>
    %519 = arith.addi %411, %518 : vector<1x256xi32>
    %c0_i32_209 = arith.constant 0 : i32
    %520 = vector.broadcast %c0_i32_209 : i32 to vector<1x256xi32>
    %521 = arith.cmpi sge, %519, %520 : vector<1x256xi32>
    %522 = arith.andi %517, %521 : vector<1x256xi1>
    %c1_i32_210 = arith.constant 1 : i32
    %523 = vector.broadcast %c1_i32_210 : i32 to vector<1x256xi32>
    %524 = arith.addi %411, %523 : vector<1x256xi32>
    %c16_i32_211 = arith.constant 16 : i32
    %525 = vector.broadcast %c16_i32_211 : i32 to vector<1x256xi32>
    %526 = arith.cmpi slt, %524, %525 : vector<1x256xi32>
    %527 = arith.andi %522, %526 : vector<1x256xi1>
    %cst_212 = arith.constant 0.000000e+00 : f32
    %528 = vector.shape_cast %527 : vector<1x256xi1> to vector<1x256xi1>
    %529 = vector.broadcast %528 : vector<1x256xi1> to vector<8x256xi1>
    %530 = vector.broadcast %cst_212 : f32 to vector<8x256xf32>
    %531 = arith.select %529, %508, %530 : vector<8x256xi1>, vector<8x256xf32>
    %c241_i32_213 = arith.constant 241 : i32
    %532 = tpu.dynamic_rotate %406 by %c241_i32_213 dim 1 : vector<8x256xf32>, i32 -> vector<8x256xf32>
    %c1_i32_214 = arith.constant 1 : i32
    %533 = vector.broadcast %c1_i32_214 : i32 to vector<1x256xi32>
    %534 = arith.addi %409, %533 : vector<1x256xi32>
    %c0_i32_215 = arith.constant 0 : i32
    %535 = vector.broadcast %c0_i32_215 : i32 to vector<1x256xi32>
    %536 = arith.cmpi sge, %534, %535 : vector<1x256xi32>
    %c1_i32_216 = arith.constant 1 : i32
    %537 = vector.broadcast %c1_i32_216 : i32 to vector<1x256xi32>
    %538 = arith.addi %409, %537 : vector<1x256xi32>
    %c16_i32_217 = arith.constant 16 : i32
    %539 = vector.broadcast %c16_i32_217 : i32 to vector<1x256xi32>
    %540 = arith.cmpi slt, %538, %539 : vector<1x256xi32>
    %541 = arith.andi %536, %540 : vector<1x256xi1>
    %c-1_i32_218 = arith.constant -1 : i32
    %542 = vector.broadcast %c-1_i32_218 : i32 to vector<1x256xi32>
    %543 = arith.addi %411, %542 : vector<1x256xi32>
    %c0_i32_219 = arith.constant 0 : i32
    %544 = vector.broadcast %c0_i32_219 : i32 to vector<1x256xi32>
    %545 = arith.cmpi sge, %543, %544 : vector<1x256xi32>
    %546 = arith.andi %541, %545 : vector<1x256xi1>
    %c-1_i32_220 = arith.constant -1 : i32
    %547 = vector.broadcast %c-1_i32_220 : i32 to vector<1x256xi32>
    %548 = arith.addi %411, %547 : vector<1x256xi32>
    %c16_i32_221 = arith.constant 16 : i32
    %549 = vector.broadcast %c16_i32_221 : i32 to vector<1x256xi32>
    %550 = arith.cmpi slt, %548, %549 : vector<1x256xi32>
    %551 = arith.andi %546, %550 : vector<1x256xi1>
    %cst_222 = arith.constant 0.000000e+00 : f32
    %552 = vector.shape_cast %551 : vector<1x256xi1> to vector<1x256xi1>
    %553 = vector.broadcast %552 : vector<1x256xi1> to vector<8x256xi1>
    %554 = vector.broadcast %cst_222 : f32 to vector<8x256xf32>
    %555 = arith.select %553, %532, %554 : vector<8x256xi1>, vector<8x256xf32>
    %c240_i32_223 = arith.constant 240 : i32
    %556 = tpu.dynamic_rotate %406 by %c240_i32_223 dim 1 : vector<8x256xf32>, i32 -> vector<8x256xf32>
    %c1_i32_224 = arith.constant 1 : i32
    %557 = vector.broadcast %c1_i32_224 : i32 to vector<1x256xi32>
    %558 = arith.addi %409, %557 : vector<1x256xi32>
    %c0_i32_225 = arith.constant 0 : i32
    %559 = vector.broadcast %c0_i32_225 : i32 to vector<1x256xi32>
    %560 = arith.cmpi sge, %558, %559 : vector<1x256xi32>
    %c1_i32_226 = arith.constant 1 : i32
    %561 = vector.broadcast %c1_i32_226 : i32 to vector<1x256xi32>
    %562 = arith.addi %409, %561 : vector<1x256xi32>
    %c16_i32_227 = arith.constant 16 : i32
    %563 = vector.broadcast %c16_i32_227 : i32 to vector<1x256xi32>
    %564 = arith.cmpi slt, %562, %563 : vector<1x256xi32>
    %565 = arith.andi %560, %564 : vector<1x256xi1>
    %c0_i32_228 = arith.constant 0 : i32
    %566 = vector.broadcast %c0_i32_228 : i32 to vector<1x256xi32>
    %567 = arith.addi %411, %566 : vector<1x256xi32>
    %c0_i32_229 = arith.constant 0 : i32
    %568 = vector.broadcast %c0_i32_229 : i32 to vector<1x256xi32>
    %569 = arith.cmpi sge, %567, %568 : vector<1x256xi32>
    %570 = arith.andi %565, %569 : vector<1x256xi1>
    %c0_i32_230 = arith.constant 0 : i32
    %571 = vector.broadcast %c0_i32_230 : i32 to vector<1x256xi32>
    %572 = arith.addi %411, %571 : vector<1x256xi32>
    %c16_i32_231 = arith.constant 16 : i32
    %573 = vector.broadcast %c16_i32_231 : i32 to vector<1x256xi32>
    %574 = arith.cmpi slt, %572, %573 : vector<1x256xi32>
    %575 = arith.andi %570, %574 : vector<1x256xi1>
    %cst_232 = arith.constant 0.000000e+00 : f32
    %576 = vector.shape_cast %575 : vector<1x256xi1> to vector<1x256xi1>
    %577 = vector.broadcast %576 : vector<1x256xi1> to vector<8x256xi1>
    %578 = vector.broadcast %cst_232 : f32 to vector<8x256xf32>
    %579 = arith.select %577, %556, %578 : vector<8x256xi1>, vector<8x256xf32>
    %c239_i32_233 = arith.constant 239 : i32
    %580 = tpu.dynamic_rotate %406 by %c239_i32_233 dim 1 : vector<8x256xf32>, i32 -> vector<8x256xf32>
    %c1_i32_234 = arith.constant 1 : i32
    %581 = vector.broadcast %c1_i32_234 : i32 to vector<1x256xi32>
    %582 = arith.addi %409, %581 : vector<1x256xi32>
    %c0_i32_235 = arith.constant 0 : i32
    %583 = vector.broadcast %c0_i32_235 : i32 to vector<1x256xi32>
    %584 = arith.cmpi sge, %582, %583 : vector<1x256xi32>
    %c1_i32_236 = arith.constant 1 : i32
    %585 = vector.broadcast %c1_i32_236 : i32 to vector<1x256xi32>
    %586 = arith.addi %409, %585 : vector<1x256xi32>
    %c16_i32_237 = arith.constant 16 : i32
    %587 = vector.broadcast %c16_i32_237 : i32 to vector<1x256xi32>
    %588 = arith.cmpi slt, %586, %587 : vector<1x256xi32>
    %589 = arith.andi %584, %588 : vector<1x256xi1>
    %c1_i32_238 = arith.constant 1 : i32
    %590 = vector.broadcast %c1_i32_238 : i32 to vector<1x256xi32>
    %591 = arith.addi %411, %590 : vector<1x256xi32>
    %c0_i32_239 = arith.constant 0 : i32
    %592 = vector.broadcast %c0_i32_239 : i32 to vector<1x256xi32>
    %593 = arith.cmpi sge, %591, %592 : vector<1x256xi32>
    %594 = arith.andi %589, %593 : vector<1x256xi1>
    %c1_i32_240 = arith.constant 1 : i32
    %595 = vector.broadcast %c1_i32_240 : i32 to vector<1x256xi32>
    %596 = arith.addi %411, %595 : vector<1x256xi32>
    %c16_i32_241 = arith.constant 16 : i32
    %597 = vector.broadcast %c16_i32_241 : i32 to vector<1x256xi32>
    %598 = arith.cmpi slt, %596, %597 : vector<1x256xi32>
    %599 = arith.andi %594, %598 : vector<1x256xi1>
    %cst_242 = arith.constant 0.000000e+00 : f32
    %600 = vector.shape_cast %599 : vector<1x256xi1> to vector<1x256xi1>
    %601 = vector.broadcast %600 : vector<1x256xi1> to vector<8x256xi1>
    %602 = vector.broadcast %cst_242 : f32 to vector<8x256xf32>
    %603 = arith.select %601, %580, %602 : vector<8x256xi1>, vector<8x256xf32>
    %604 = tpu.concatenate %435, %459, %483, %507, %406, %531, %555, %579, %603 in 0 : vector<8x256xf32>, vector<8x256xf32>, vector<8x256xf32>, vector<8x256xf32>, vector<8x256xf32>, vector<8x256xf32>, vector<8x256xf32>, vector<8x256xf32>, vector<8x256xf32> -> vector<72x256xf32>
    %605 = arith.truncf %604 : vector<72x256xf32> to vector<72x256xbf16>
    %c0_243 = arith.constant 0 : index
    %c0_244 = arith.constant 0 : index
    %606 = vector.load %arg4[%c0_243, %c0_244] : memref<8x72xbf16, #tpu.memory_space<vmem>>, vector<8x72xbf16>
    %cst_245 = arith.constant dense<0.000000e+00> : vector<8x256xf32>
    %607 = tpu.matmul %606, %605, %cst_245 {dimension_numbers = #tpu.dot_dimension_numbers<[1], [0], [0], [1], [0, 0, 1, 1], [], []>} : vector<8x72xbf16>, vector<72x256xbf16>, vector<8x256xf32> -> vector<8x256xf32>
    %c0_246 = arith.constant 0 : index
    %c0_247 = arith.constant 0 : index
    %c0_248 = arith.constant 0 : index
    %608 = vector.load %arg5[%c0_246, %c0_247, %c0_248] : memref<1x8x256xf32, #tpu.memory_space<vmem>>, vector<1x8x256xf32>
    %609 = vector.shape_cast %608 : vector<1x8x256xf32> to vector<8x256xf32>
    %610 = vector.shape_cast %607 : vector<8x256xf32> to vector<1x8x256xf32>
    tpu.vector_store %arg5[%c0_246, %c0_247, %c0_248], %610 {strides = array<i32>} : memref<1x8x256xf32, #tpu.memory_space<vmem>>, vector<1x8x256xf32>,
    return
  }
  func.func @transform_0(%arg0: i32) -> (i32, i32, i32) {
    %c0_i32 = arith.constant 0 : i32
    %c0_i32_0 = arith.constant 0 : i32
    %c0_i32_1 = arith.constant 0 : i32
    return %arg0, %c0_i32, %c0_i32_0 : i32, i32, i32
  }
  func.func @transform_1(%arg0: i32) -> (i32, i32) {
    %c0_i32 = arith.constant 0 : i32
    %c0_i32_0 = arith.constant 0 : i32
    %c0_i32_1 = arith.constant 0 : i32
    return %c0_i32, %c0_i32_0 : i32, i32
  }
  func.func @transform_2(%arg0: i32) -> (i32, i32) {
    %c0_i32 = arith.constant 0 : i32
    %c0_i32_0 = arith.constant 0 : i32
    %c0_i32_1 = arith.constant 0 : i32
    return %c0_i32, %c0_i32_0 : i32, i32
  }
  func.func @transform_3(%arg0: i32) -> (i32, i32) {
    %c0_i32 = arith.constant 0 : i32
    %c0_i32_0 = arith.constant 0 : i32
    %c0_i32_1 = arith.constant 0 : i32
    return %c0_i32, %c0_i32_0 : i32, i32
  }
  func.func @transform_4(%arg0: i32) -> (i32, i32, i32) {
    %c0_i32 = arith.constant 0 : i32
    %c0_i32_0 = arith.constant 0 : i32
    %c0_i32_1 = arith.constant 0 : i32
    return %arg0, %c0_i32, %c0_i32_0 : i32, i32, i32
  }
}

</mosaic_0001>

<bundles_post_ra>
// kernel: tpu_custom_call.1
= control target key start
LH: loop header
LB: loop body
LE: loop exit
PB: predicated region body
PF: predicated region fallthrough
CT: control target
= control target key end

     0   :  { %9 = vsyncpa [#allocation3], 0  ;;  %s1884_s0 = inlined_call_operand.hbm [shape: f32[2,8,256], index: 0, kind: input, shape index: {}]   ;;  %s1885_s1 = inlined_call_operand.hbm [shape: bf16[8,72], index: 1, kind: input, shape index: {}]   ;;  %s1886_s2 = inlined_call_operand.vmem [shape: bf16[8,72], index: 2, kind: input, shape index: {}]   ;;  %s1887_s3 = inlined_call_operand.vmem [shape: bf16[8,72], index: 3, kind: input, shape index: {}]   ;;  %s1888_s4 = inlined_call_operand.hbm [shape: f32[2,8,256], index: 4, kind: output, shape index: {}]  }
   0x1   :  { %11 = vsyncpa [#allocation3 + $0x1], 0 }
   0x2   :  { %12 = vsyncpa [#allocation6], 0 }
   0x3   :  { %13 = vsyncpa [#allocation4], 0 }
   0x4   :  { %15 = vsyncpa [#allocation4 + $0x1], 0  ;;  %s1274_s15 = smov 0   ;;  %s1276_s16 = smov 0  }
   0x5   :  { %s1278_s17 = smov 0   ;;  %s1280_s18 = smov 0  }
   0x6 LB: > { %s1295_s19 = sadd.s32 4294967295, %s1234_s18   ;;  %s823_s20 = sadd.s32 4294967294, %s1234_s18   ;;  %s1234_s18 = sphi %s1280_s18, %s2010_s18   ;;  %s1230_s17 = sphi %s1278_s17, %s2009_s17   ;;  %s1226_s16 = sphi %s1276_s16, %s2008_s16   ;;  %s1222_s15 = sphi %s1274_s15, %s2007_s15  }
   0x7   : > { %p41_p0 = scmp.ne.s32.totalorder %s1226_s16, %s1222_s15  ;;  %p1889_p1 = scmp.eq.s32.totalorder %s1295_s19, 0 }
   0x8   : > { %p134_p3 = scmp.eq.s32.totalorder %s823_s20, 1  ;;  %p824_p5 = scmp.ge.s32.totalorder %s1234_s18, 1 }
   0x9   : > { %p1304_p4 = por %p1889_p1, %p41_p0  ;;  %p141_p7 = scmp.lt.s32.totalorder %s1234_s18, 3 }
   0xa   : > { %p1309_p6 = por %p134_p3, %p41_p0  ;;  %s1236_s24 = smov [#allocation5]  }
   0xb   : > { %s1899_s21 = scalar_select %p1304_p4, 1, 0 }
   0xc   : > { %s1900_s22 = scalar_select %p1309_p6, 1, 0 }
   0xd   : > { %p1314_p8 = pnand %p824_p5, %p141_p7  ;;  %s154_s25 = sshll.u32 %s1236_s24, 4  ;;  %s155_s25 = int_to_ptr.vmem [resolvable:$true] %s154_s25 }
   0xe   : > { %s1322_s26 = sadd.s32 1, %s1234_s18   ;;  %s28_s30 = sadd.s32 1, %s1230_s17 }
   0xf   : > { %s1901_s23 = scalar_select %p1314_p8, 1, 0 }
  0x10   : > { %p927_p10 = pneg %p1314_p8  ;;  %s25_s28 = ssub.s32 %s1234_s18, %s1322_s26 }
  0x11   : > { %p1332_p12 = scmp.eq.s32.totalorder %s25_s28, 0  ;;  %s1106_s7 = scalar_lea.hbm %s1885_s1, 64 }
  0x12   : > { %p1326_p11 = pnand %p927_p10, %p1889_p1  ;;  %p1107_p0 = scmp.ne.s32.totalorder %s1885_s1, %s1106_s7 }
  0x13   : > { %s1903_s29 = scalar_select %p1332_p12, 1, 0 }
  0x14   : > { %p1108_p3 = pneg %p1326_p11  ;;  %p1113_p10 = scmp.lt.u32.totalorder %s1106_s7, %s1885_s1 }
  0x16   : > { %p1109_p5 = pnand %p1108_p3, %p1107_p0 }
  0x18   : > { %p1110_p7 = pneg %p1109_p5 }
  0x1a   : > { %p1115_p9 = pnand %p1113_p10, %p1110_p7 }
  0x1c   : > { %1118 = shalt.err (!%p1115_p9)
}
  0x1d   : > { %s1119_s12 = scalar_lea.vmem %s155_s25, 64  ;;  %p1127_p6 = scmp.lt.s32.totalorder %s155_s25, %s155_s25 }
  0x1e   : > { %p1120_p1 = scmp.ne.s32.totalorder %s155_s25, %s1119_s12  ;;  %p1128_p4 = scmp.lt.s32.totalorder %s1119_s12, %s1119_s12 }
  0x20   : > { %p1122_p2 = pnand %p1120_p1, %p1108_p3  ;;  %p1129_p8 = por %p1128_p4, %p1127_p6 }
  0x22   : > { %p1123_p13 = pneg %p1122_p2 }
  0x24   : > { %p1130_p12 = pnand %p1129_p8, %p1123_p13 }
  0x26   : > { %1133 = shalt.err (!%p1130_p12)
}
  0x27   : > { %930 = dma.hbm_to_vmem [thread:$0]  (!%p1326_p11), %s1885_s1, 64, %s155_s25, [#allocation6]  }
  0x28   : > { %p1904_p1 = scmp.ne.s32.totalorder %s1903_s29, 0  ;;  %p36_p2 = scmp.eq.s32.totalorder %s1234_s18, 0 }
  0x29   : > { %p1905_p4 = scmp.ne.s32.totalorder %s1230_s17, %s1226_s16  ;;  %p1906_p6 = scmp.eq.s32.totalorder %s1295_s19, 1 }
  0x2a   : > { %s1358_s20 = scalar_select %p1904_p1, %s1230_s17, %s28_s30  }
  0x2b   : > { %p1366_p8 = por %p1906_p6, %p1905_p4  ;;  %p940_p9 = scmp.lt.s32.totalorder %s1234_s18, 2 }
  0x2c   : > { %s171_s27 = sand.u32 1, %s1230_s17   ;;  %p1908_p12 = pmov %p1905_p4 }
  0x2d   : > { %s827_s28 = sshll.u32 %s171_s27, 4  ;;  %s917_s5 = sshll.u32 %s1234_s18, 8 }
  0x2e   : > { %p37_p13 = por %p36_p2, %p1908_p12  ;;  %s1379_s25 = scalar_lea.hbm %s1884_s0, %s917_s5 }
  0x2f   : > { %s175_s29 = scalar_lea.vmem [#allocation2], %s827_s28  ;;  %s172_s9 = scalar_lea.sflag [#allocation3], %s171_s27 }
  0x30   : > { %s183_s30 = sshll.u32 %s175_s29, 4  ;;  %p1381_p11 = pnand %p940_p9, %p37_p13  ;;  %s1385_s30 = int_to_ptr.vmem [resolvable:$true] %s183_s30 }
  0x31   : > { %s1134_s10 = scalar_lea.hbm %s1379_s25, 256  ;;  %s1139_s13 = scalar_lea.hbm %s1884_s0, 512 }
  0x32   : > { %p1135_p0 = scmp.ne.s32.totalorder %s1379_s25, %s1134_s10  ;;  %p1136_p3 = pneg %p1381_p11 }
  0x33   : > { %p1140_p10 = scmp.lt.u32.totalorder %s1379_s25, %s1884_s0  ;;  %p1141_p1 = scmp.lt.u32.totalorder %s1139_s13, %s1134_s10 }
  0x34   : > { %p1137_p5 = pnand %p1136_p3, %p1135_p0  ;;  %p1143_p4 = scmp.lt.u32.totalorder %s1134_s10, %s1379_s25 }
  0x35   : > { %p1142_p2 = por %p1141_p1, %p1140_p10 }
  0x36   : > { %p1138_p7 = pneg %p1137_p5 }
  0x37   : > { %p1144_p6 = por %p1143_p4, %p1142_p2 }
  0x39   : > { %p1145_p9 = pnand %p1144_p6, %p1138_p7 }
  0x3b   : > { %1148 = shalt.err (!%p1145_p9)
}
  0x3c   : > { %s1149_s27 = scalar_lea.vmem %s1385_s30, 256  ;;  %s1237_s5 = smov [#allocation2]  }
  0x3d   : > { %p1150_p12 = scmp.ne.s32.totalorder %s1385_s30, %s1149_s27  ;;  %s1154_s6 = sshll.u32 %s1237_s5, 4  ;;  %s1155_s6 = int_to_ptr.vmem [resolvable:$false] %s1154_s6 }
  0x3e   : > { %s1156_s7 = scalar_lea.vmem %s1155_s6, 512  ;;  %p1157_p5 = scmp.lt.s32.totalorder %s1385_s30, %s1155_s6 }
  0x3f   : > { %p1152_p13 = pnand %p1150_p12, %p1136_p3  ;;  %p1158_p10 = scmp.lt.s32.totalorder %s1156_s7, %s1149_s27 }
  0x41   : > { %p1153_p0 = pneg %p1152_p13  ;;  %p1159_p1 = por %p1158_p10, %p1157_p5 }
  0x43   : > { %p1160_p2 = pnand %p1159_p1, %p1153_p0 }
  0x45   : > { %1163 = shalt.err (!%p1160_p2)
}
  0x46   : > { %934 = dma.hbm_to_vmem [thread:$0]  (!%p1381_p11), %s1379_s25, 256, %s1385_s30, %s172_s9  }
  0x47   : > { %p1910_p7 = scmp.ne.s32.totalorder %s1901_s23, 0 }
  0x48   : > { %s1415_s29 = sand.u32 (!%p1910_p7), 1, %s1226_s16   ;;  %p1911_p3 = scmp.ne.s32.totalorder (!%p1910_p7), %s1899_s21, 0 }
  0x49   : > { %192 = sbr.rel (%p1910_p7) target bundleno = 1173 (0x495), region = 36  ;;  %s831_s10 = sshll.u32 (!%p1910_p7), %s1415_s29, 4 }
  0x4a   : > { %s195_s11 = scalar_lea.sflag (!%p1910_p7), [#allocation3], %s1415_s29  ;;  %s198_s12 = scalar_lea.vmem (!%p1910_p7), [#allocation2], %s831_s10 }
  0x50   : > { %1209 = dma.done.wait (%p1911_p3), %s195_s11, 256  }
  0x51   : > { %1211 = vsyncadd (%p1911_p3), %s195_s11, 4294967040  ;;  %p1912_p11 = scmp.eq.s32.totalorder %s1295_s19, 0 }
  0x53   : > { %1213 = dma.done.wait (%p1912_p11), [#allocation6], 64   ;;  %p1913_p4 = pmov %p1912_p11 }
  0x54   : > { %v1429_v0 = vld [vmem:[%s198_s12] sm:$0xff]  ;;  %v1431_v1 = vld [vmem:[%s198_s12 + $0x8] sm:$0xff]  ;;  %s1238_s23 = smov 15   ;;  %s1239_s25 = smov 17   ;;  %v1246_v3 = vmov 0   ;;  %v230_v4 = vlaneseq }
  0x55   : > { %1215 = vsyncadd (%p1913_p4), [#allocation6], 4294967232  ;;  %v996_v2 = vpack.i.bf16 %v1431_v1, %v1429_v0  ;;  %s1240_s21 = smov 1   ;;  %s1241_s30 = smov 16   ;;  %465 = vmatprep.mubr.bf16.mxu0 %v1246_v3  ;;  %592 = vmatprep.mubr.bf16.mxu1 %v1246_v3 }
  0x56   : > { %s1242_s8 = smov 127   ;;  %s1243_s9 = smov 113   ;;  %v1445_v5 = vand.u32 127, %v230_v4 }
  0x57   : > { %997 = vrot.lane.b32.xlu1 %v996_v2, %s1238_s23  ;;  %987 = vrot.lane.b32.xlu0 %v996_v2, %s1239_s25  ;;  %s1244_s13 = smov 112   ;;  %s1245_s14 = smov 111  }
  0x58   : > { %v232_v6 = vadd.s32 128, %v1445_v5  ;;  %v233_v8 = vshra.s32 %v1445_v5, 4  ;;  %v235_v11 = vand.u32 15, %v1445_v5  ;;  %s226_s7 = scalar_lea.vmem [#allocation7], %s831_s10  ;;  %s918_s12 = sshll.u32 %s1295_s19, 8 }
  0x59   : > { %s743_s11 = sshll.u32 %s226_s7, 4  ;;  %s1248_s19 = smov [#allocation7]   ;;  %s1837_s11 = int_to_ptr.vmem [resolvable:$true] %s743_s11 }
  0x5a   : > { %v234_v7 = vshra.s32 %v232_v6, 4  ;;  %v236_v9 = vand.u32 15, %v232_v6  ;;  %v244_v12 = vadd.s32 4294967295, %v233_v8  ;;  %v1452_v14 = vadd.s32 4294967295, %v235_v11  ;;  %s1164_s10 = scalar_lea.vmem %s1837_s11, 256 }
  0x5b   : > { %1002 = vrot.lane.b32.xlu1 %v996_v2, %s1240_s21  ;;  %992 = vrot.lane.b32.xlu0 %v996_v2, %s1241_s30  ;;  %v1470_v18 = vadd.s32 1, %v235_v11  ;;  %vm319_vm13 = vcmp.ge.s32.totalorder %v233_v8, 0  ;;  %vm321_vm14 = vcmp.lt.s32.totalorder %v233_v8, 16  ;;  %v359_v27 = vadd.s32 1, %v233_v8  ;;  %p1165_p6 = scmp.ne.s32.totalorder %s1837_s11, %s1164_s10 }
  0x5c   : > { %v245_v10 = vadd.s32 4294967295, %v234_v7  ;;  %v1450_v13 = vadd.s32 4294967295, %v236_v9  ;;  %vm246_vm2 = vcmp.ge.s32.totalorder %v244_v12, 0  ;;  %vm248_vm3 = vcmp.lt.s32.totalorder %v244_v12, 16 }
  0x5d   : > { %v1459_v16 = vadd.s32 1, %v236_v9  ;;  %vm1461_vm6 = vmand %vm246_vm2, %vm248_vm3  ;;  %vm1893_vm7 = vcmp.ge.s32.totalorder %v1452_v14, 0  ;;  %vm320_vm9 = vcmp.ge.s32.totalorder %v234_v7, 0  ;;  %vm322_vm10 = vcmp.lt.s32.totalorder %v234_v7, 16  ;;  %p1166_p9 = pnand %p1165_p6, %p1366_p8 }
  0x5e   : > { %vm247_vm0 = vcmp.ge.s32.totalorder %v245_v10, 0  ;;  %vm249_vm1 = vcmp.lt.s32.totalorder %v245_v10, 16  ;;  %vm1892_vm5 = vcmp.ge.s32.totalorder %v1450_v13, 0  ;;  %vm256_vm11 = vmand %vm1461_vm6, %vm1893_vm7  ;;  %vm1894_vm3 = vcmp.lt.s32.totalorder %v1470_v18, 16 }
  0x5f   : > { %1007 = vrot.lane.b32.xlu0 %v996_v2, %s1242_s8  ;;  %1012 = vrot.lane.b32.xlu1 %v996_v2, %s1243_s9  ;;  %vm1454_vm4 = vmand %vm247_vm0, %vm249_vm1  ;;  %vm1895_vm12 = vcmp.lt.s32.totalorder %v1459_v16, 16  ;;  %v360_v25 = vadd.s32 1, %v234_v7  ;;  %p1167_p12 = pneg %p1166_p9 }
  0x60   : > { %vm257_vm8 = vmand %vm1454_vm4, %vm1892_vm5 }
  0x61   : > { %vm1479_vm15 = vmpackc.low %vm1454_vm4, %vm257_vm8 }
  0x62   : > { %vm1483_vm0 = vmand %vm320_vm9, %vm322_vm10 }
  0x63   : > { %1017 = vrot.lane.b32.xlu0 %v996_v2, %s1244_s13  ;;  %1022 = vrot.lane.b32.xlu1 %v996_v2, %s1245_s14  ;;  %vm1489_vm1 = vmpackc.low %vm1461_vm6, %vm256_vm11  ;;  %vm1896_vm11 = vcmp.lt.s32.totalorder %v1445_v5, 17 }
  0x64   : > { %vm1497_vm2 = vmand %vm1454_vm4, %vm1895_vm12 }
  0x65   : > { %vm1503_vm9 = vmand %vm319_vm13, %vm321_vm14  ;;  %vm364_vm13 = vcmp.lt.s32.totalorder %v360_v25, 16  ;;  %vm363_vm14 = vcmp.lt.s32.totalorder %v359_v27, 16 }
  0x66   : > { %vm1511_vm4 = vmand %vm1483_vm0, %vm1892_vm5  ;;  %vm1936_vm5 = vcmp.lt.s32.totalorder %v1445_v5, 15 }
  0x67   : > { %vm1523_vm8 = vmand %vm1461_vm6, %vm1894_vm3  ;;  %vm361_vm3 = vcmp.ge.s32.totalorder %v359_v27, 0 }
  0x68   : > { %vm1532_vm10 = vmand %vm1503_vm9, %vm1893_vm7 }
  0x69   : > { %vm1540_vm6 = vmand %vm1483_vm0, %vm1895_vm12  ;;  %vm1939_vm0 = vcmp.lt.s32.totalorder %v1445_v5, 1  ;;  %vm1940_vm12 = vcmp.lt.s32.totalorder %v1445_v5, 16 }
  0x6a   : > { %vm1552_vm7 = vmpackc.low %vm1511_vm4, %vm1497_vm2  ;;  %vm1944_vm4 = vcmp.lt.s32.totalorder %v1445_v5, 15 }
  0x6b   : > { %vm1568_vm2 = vmpackc.low %vm1532_vm10, %vm1523_vm8  ;;  %vm1947_vm8 = vcmp.ge.s32.totalorder %v360_v25, 0 }
  0x6c   : > { %vm1585_vm10 = vmand %vm1947_vm8, %vm364_vm13  ;;  %vm381_vm13 = vcmp.lt.s32.totalorder %v1445_v5, 112  ;;  %vm1897_vm8 = vcmp.lt.s32.totalorder %v1445_v5, 111 }
  0xc9   : > { %v998_v21 = vpop.permute.xlu1 %997  ;;  %v988_v22 = vpop.permute.xlu0 %987 }
  0xca   : > { %v1000_v28 = vunpack.i.h.bf16 %v998_v21  ;;  %v999_v29 = vunpack.i.l.bf16 %v998_v21  ;;  %v990_v30 = vunpack.i.h.bf16 %v988_v22  ;;  %v989_v31 = vunpack.i.l.bf16 %v988_v22  ;;  %v675_v22 = vld [vmem:[%s1887_s3] sm:$0xf] }
  0xcc   : > { %v294_v42 = vsel %vm1936_vm5, %v999_v29, %v1000_v28  ;;  %v242_v43 = vsel %vm1896_vm11, %v989_v31, %v990_v30  ;;  %v243_v47 = vsel %vm1896_vm11, %v990_v30, %v989_v31  ;;  %vm1941_vm5 = vmmov %vm1940_vm12  ;;  %v295_v50 = vsel %vm1944_vm4, %v1000_v28, %v999_v29 }
  0xcd   : > { %v1003_v34 = vpop.permute.xlu1 %1002  ;;  %v993_v35 = vpop.permute.xlu0 %992  ;;  %vm1950_vm4 = vcmp.lt.s32.totalorder %v1470_v18, 16  ;;  %vm1607_vm11 = vmand %vm361_vm3, %vm363_vm14  ;;  %vm1961_vm14 = vcmp.lt.s32.totalorder %v1459_v16, 16 }
  0xce   : > { %v1005_v37 = vunpack.i.h.bf16 %v1003_v34  ;;  %v1004_v38 = vunpack.i.l.bf16 %v1003_v34  ;;  %v995_v39 = vunpack.i.h.bf16 %v993_v35  ;;  %v994_v40 = vunpack.i.l.bf16 %v993_v35 }
  0xd0   : > { %v317_v45 = vsel %vm1939_vm0, %v1004_v38, %v1005_v37  ;;  %v273_v46 = vsel %vm1940_vm12, %v994_v40, %v995_v39  ;;  %v274_v48 = vsel %vm1941_vm5, %v995_v39, %v994_v40  ;;  %v318_v51 = vsel %vm1939_vm0, %v1005_v37, %v1004_v38  ;;  %v421_v37 = vld [vmem:[#allocation5] sm:$0xf] }
  0xd1   : > { %v835_v52 = vpack.c.bf16 %v273_v46, %v242_v43  ;;  %v1008_v53 = vpop.permute.xlu0 %1007  ;;  %v838_v54 = vpack.c.bf16 %v274_v48, %v243_v47  ;;  %v1013_v55 = vpop.permute.xlu1 %1012  ;;  %vm1247_vm12 = vmmov 1   ;;  %v841_v62 = vpack.c.bf16 %v317_v45, %v294_v42 }
  0xd2   : > { %vm1579_vm5 = vmpackc.low %vm1540_vm6, %vm1247_vm12  ;;  %v1010_v57 = vunpack.i.h.bf16 %v1008_v53  ;;  %v1009_v58 = vunpack.i.l.bf16 %v1008_v53  ;;  %v1015_v59 = vunpack.i.h.bf16 %v1013_v55  ;;  %v1014_v60 = vunpack.i.l.bf16 %v1013_v55 }
  0xd3   : > { %836 = vmatprep.subr.msk.bf16.mxu0 %vm1479_vm15, %v835_v52  ;;  %vm1595_vm6 = vmand %vm1503_vm9, %vm1950_vm4  ;;  %vm1953_vm0 = vcmp.lt.s32.totalorder %v1445_v5, 127  ;;  %v844_v6 = vpack.c.bf16 %v318_v51, %v295_v50  ;;  %vm1957_vm4 = vcmp.lt.s32.totalorder %v1445_v5, 113 }
  0xd4   : > { %v341_v2 = vsel %vm1953_vm0, %v1010_v57, %v1009_v58  ;;  %839 = vmatpush1.bf16.msk.msra.mxu0 %vm1489_vm1, %v838_v54  ;;  %vm1956_vm9 = vmmov %vm1953_vm0  ;;  %v358_v9 = vsel %vm1957_vm4, %v1015_v59, %v1014_v60  ;;  %vm1958_vm0 = vcmp.ge.s32.totalorder %v1450_v13, 0  ;;  %vm1964_vm4 = vcmp.lt.s32.totalorder %v1470_v18, 16 }
  0xd5   : > { %v340_v7 = vsel %vm1956_vm9, %v1009_v58, %v1010_v57  ;;  %v847_v8 = vpack.c.bf16 %v341_v2, %v1431_v1  ;;  %842 = vmatprep.subr.msk.bf16.mxu0 %vm1552_vm7, %v841_v62  ;;  %v1018_v10 = vpop.permute.xlu0 %1017  ;;  %v1023_v11 = vpop.permute.xlu1 %1022  ;;  %vm1622_vm3 = vmand %vm1585_vm10, %vm1958_vm0 }
  0xd6   : > { %v1020_v15 = vunpack.i.h.bf16 %v1018_v10  ;;  %v1019_v17 = vunpack.i.l.bf16 %v1018_v10  ;;  %v1025_v20 = vunpack.i.h.bf16 %v1023_v11  ;;  %v1024_v21 = vunpack.i.l.bf16 %v1023_v11  ;;  %vm1630_vm9 = vmand %vm1585_vm10, %vm1961_vm14 }
  0xd7   : > { %vm1638_vm0 = vmand %vm1607_vm11, %vm1964_vm4  ;;  %v850_v24 = vpack.c.bf16 %v340_v7, %v1429_v0 }
  0xd8   : > { %v383_v25 = vsel %vm381_vm13, %v1020_v15, %v1019_v17  ;;  %845 = vmatpush1.bf16.msk.msra.mxu0 %vm1568_vm2, %v844_v6  ;;  %v400_v16 = vsel %vm1897_vm8, %v1025_v20, %v1024_v21  ;;  %vm1652_vm14 = vmpackc.low %vm1595_vm6, %vm1247_vm12  ;;  %v399_v26 = vsel %vm1897_vm8, %v1024_v21, %v1025_v20  ;;  %vm1971_vm12 = vcmp.ge.s32.totalorder %v1452_v14, 0 }
  0xd9   : > { %v853_v27 = vpack.c.bf16 %v383_v25, %v358_v9  ;;  %848 = vmatprep.subr.msk.bf16.mxu0 %vm1579_vm5, %v847_v8  ;;  %vm1664_vm4 = vmpackc.low %vm1585_vm10, %vm1622_vm3  ;;  %v410_v29 = vsel %vm1630_vm9, %v400_v16, 0.0  ;;  %v409_v30 = vsel %vm1638_vm0, %v399_v26, 0.0  ;;  %vm1972_vm8 = vcmp.lt.s32.totalorder %v1445_v5, 113 }
  0xda   : > { %vm367_vm6 = vmand %vm1607_vm11, %vm1971_vm12  ;;  %v357_v31 = vsel %vm1972_vm8, %v1014_v60, %v1015_v59  ;;  %v382_v32 = vsel %vm381_vm13, %v1019_v17, %v1020_v15  ;;  %v420_v33 = vpack.c.bf16 %v410_v29, %v410_v29  ;;  %v419_v34 = vpack.c.bf16 %v409_v30, %v409_v30 }
  0xdb   : > { %vm1686_vm10 = vmpackc.low %vm1607_vm11, %vm367_vm6  ;;  %v856_v35 = vpack.c.bf16 %v382_v32, %v357_v31  ;;  %vm426_vm3 = vcmask 1043456   ;;  %vm1898_vm8 = vcmask 588800   ;;  %vm1975_vm11 = vcmp.lt.s32.totalorder %v1445_v5, 17 }
  0xdc   : > { %851 = vmatpush1.bf16.msk.msra.mxu0 %vm1652_vm14, %v850_v24  ;;  %v428_v36 = vsel %vm426_vm3, %v419_v34, 0  ;;  %vm1976_vm12 = vcmp.lt.s32.totalorder %v1445_v5, 16  ;;  %vm1977_vm6 = vmmov %vm1975_vm11 }
  0xdd   : > { %854 = vmatprep.subr.msk.bf16.mxu0 %vm1664_vm4, %v853_v27 }
  0xe0   : > { %857 = vmatpush1.bf16.msk.msra.mxu0 %vm1686_vm10, %v856_v35 }
  0xe1   : > { %858 = vmatprep.subr.msk.bf16.mxu0 %vm426_vm3, %v420_v33 }
  0xe4   : > { %442 = vmatpush1.bf16.msra.mxu0 %v428_v36 }
  0xe7   : > { %859 = vmatmul.mubr.msk.bf16.vlgmr.msra.gmra.mrb[0].mxu0 %vm1898_vm8, %v421_v37  ;;  %vm1978_vm8 = vmmov %vm1976_vm12 }
  0xe8   : > { %717 = vmatprep.mubr.bf16.mxu0 %v1246_v3 }
 0x1ba   : > { %v467_v38 = vpop.f32.mrb[0].mxu0 }
 0x1bb   : > { %v474_v39 = vmax.f32 %v467_v38, 0.0  ;;  %v469_v40 = vpop.f32.mrb[1].mxu0 }
 0x1bc   : > { %v475_v41 = vmax.f32 %v469_v40, 0.0  ;;  %v471_v42 = vpop.f32.mrb[2].mxu0 }
 0x1bd   : > { %v472_v43 = vpop.f32.mrb[3].mxu0 }
 0x1be   : > { %v1031_v45 = vpack.i.bf16 %v475_v41, %v474_v39 }
 0x1c0   : > { %1032 = vrot.lane.b32.xlu1 %v1031_v45, %s1241_s30  ;;  %1027 = vrot.lane.b32.xlu0 %v1031_v45, %s1239_s25 }
 0x1c4   : > { %1042 = vrot.lane.b32.xlu1 %v1031_v45, %s1240_s21  ;;  %1037 = vrot.lane.b32.xlu0 %v1031_v45, %s1238_s23 }
 0x1c8   : > { %1052 = vrot.lane.b32.xlu1 %v1031_v45, %s1243_s9  ;;  %1047 = vrot.lane.b32.xlu0 %v1031_v45, %s1242_s8 }
 0x1cc   : > { %1062 = vrot.lane.b32.xlu1 %v1031_v45, %s1245_s14  ;;  %1057 = vrot.lane.b32.xlu0 %v1031_v45, %s1244_s13 }
 0x232   : > { %v1033_v3 = vpop.permute.xlu1 %1032  ;;  %v1028_v46 = vpop.permute.xlu0 %1027 }
 0x233   : > { %v1035_v47 = vunpack.i.h.bf16 %v1033_v3  ;;  %v1034_v48 = vunpack.i.l.bf16 %v1033_v3  ;;  %v1030_v50 = vunpack.i.h.bf16 %v1028_v46  ;;  %v1029_v51 = vunpack.i.l.bf16 %v1028_v46 }
 0x235   : > { %v480_v52 = vsel %vm1975_vm11, %v1029_v51, %v1030_v50  ;;  %v488_v53 = vsel %vm1976_vm12, %v1034_v48, %v1035_v47  ;;  %v481_v54 = vsel %vm1977_vm6, %v1030_v50, %v1029_v51  ;;  %v489_v55 = vsel %vm1978_vm8, %v1035_v47, %v1034_v48  ;;  %v550_v47 = vld [vmem:[%s1886_s2] sm:$0xf] }
 0x236   : > { %v1043_v57 = vpop.permute.xlu1 %1042  ;;  %v1038_v58 = vpop.permute.xlu0 %1037  ;;  %v861_v59 = vpack.c.bf16 %v488_v53, %v480_v52  ;;  %v864_v60 = vpack.c.bf16 %v489_v55, %v481_v54  ;;  %vm1979_vm11 = vcmp.lt.s32.totalorder %v1445_v5, 1  ;;  %vm1981_vm6 = vcmp.lt.s32.totalorder %v1445_v5, 15 }
 0x237   : > { %v1045_v61 = vunpack.i.h.bf16 %v1043_v57  ;;  %v1044_v62 = vunpack.i.l.bf16 %v1043_v57  ;;  %v1040_v63 = vunpack.i.h.bf16 %v1038_v58  ;;  %v1039_v2 = vunpack.i.l.bf16 %v1038_v58  ;;  %vm1980_vm12 = vmmov %vm1979_vm11 }
 0x238   : > { %862 = vmatprep.subr.msk.bf16.mxu1 %vm1479_vm15, %v861_v59  ;;  %vm1982_vm8 = vmmov %vm1981_vm6 }
 0x239   : > { %v504_v4 = vsel %vm1979_vm11, %v1044_v62, %v1045_v61  ;;  %v505_v6 = vsel %vm1980_vm12, %v1045_v61, %v1044_v62  ;;  %v496_v7 = vsel %vm1981_vm6, %v1039_v2, %v1040_v63  ;;  %v497_v8 = vsel %vm1982_vm8, %v1040_v63, %v1039_v2  ;;  %865 = vmatpush1.bf16.msk.msra.mxu1 %vm1489_vm1, %v864_v60 }
 0x23a   : > { %v867_v9 = vpack.c.bf16 %v504_v4, %v496_v7  ;;  %v870_v10 = vpack.c.bf16 %v505_v6, %v497_v8  ;;  %v1053_v11 = vpop.permute.xlu1 %1052  ;;  %v1048_v12 = vpop.permute.xlu0 %1047  ;;  %vm1983_vm11 = vcmp.lt.s32.totalorder %v1445_v5, 127  ;;  %vm1985_vm6 = vcmp.lt.s32.totalorder %v1445_v5, 113 }
 0x23b   : > { %v1050_v15 = vunpack.i.h.bf16 %v1048_v12  ;;  %v1049_v17 = vunpack.i.l.bf16 %v1048_v12  ;;  %v1055_v20 = vunpack.i.h.bf16 %v1053_v11  ;;  %v1054_v21 = vunpack.i.l.bf16 %v1053_v11  ;;  %vm1984_vm12 = vmmov %vm1983_vm11 }
 0x23c   : > { %868 = vmatprep.subr.msk.bf16.mxu1 %vm1552_vm7, %v867_v9  ;;  %vm1986_vm8 = vmmov %vm1985_vm6 }
 0x23d   : > { %v512_v24 = vsel %vm1983_vm11, %v1049_v17, %v1050_v15  ;;  %v513_v25 = vsel %vm1984_vm12, %v1050_v15, %v1049_v17  ;;  %871 = vmatpush1.bf16.msk.msra.mxu1 %vm1568_vm2, %v870_v10  ;;  %v520_v34 = vsel %vm1985_vm6, %v1054_v21, %v1055_v20  ;;  %v521_v35 = vsel %vm1986_vm8, %v1055_v20, %v1054_v21 }
 0x23e   : > { %v873_v16 = vpack.c.bf16 %v513_v25, %v475_v41  ;;  %v876_v26 = vpack.c.bf16 %v512_v24, %v474_v39  ;;  %v1063_v27 = vpop.permute.xlu1 %1062  ;;  %v1058_v29 = vpop.permute.xlu0 %1057  ;;  %vm1987_vm11 = vcmp.lt.s32.totalorder %v1445_v5, 111  ;;  %vm1989_vm6 = vcmask 588800  }
 0x23f   : > { %v1065_v30 = vunpack.i.h.bf16 %v1063_v27  ;;  %v1064_v31 = vunpack.i.l.bf16 %v1063_v27  ;;  %v1060_v32 = vunpack.i.h.bf16 %v1058_v29  ;;  %v1059_v33 = vunpack.i.l.bf16 %v1058_v29  ;;  %vm1988_vm12 = vmmov %vm1987_vm11 }
 0x240   : > { %874 = vmatprep.subr.msk.bf16.mxu1 %vm1579_vm5, %v873_v16  ;;  %vm1990_vm8 = vcmp.lt.s32.totalorder %v1445_v5, 16 }
 0x241   : > { %v537_v36 = vsel %vm1987_vm11, %v1065_v30, %v1064_v31  ;;  %v528_v37 = vsel %vm381_vm13, %v1059_v33, %v1060_v32  ;;  %v529_v38 = vsel %vm381_vm13, %v1060_v32, %v1059_v33  ;;  %877 = vmatpush1.bf16.msk.msra.mxu1 %vm1652_vm14, %v876_v26  ;;  %v536_v39 = vsel %vm1988_vm12, %v1064_v31, %v1065_v30  ;;  %vm1991_vm11 = vmmov %vm1990_vm8 }
 0x242   : > { %v539_v40 = vsel %vm1630_vm9, %v537_v36, 0.0  ;;  %v879_v41 = vpack.c.bf16 %v529_v38, %v521_v35  ;;  %v882_v42 = vpack.c.bf16 %v528_v37, %v520_v34  ;;  %v538_v43 = vsel %vm1638_vm0, %v536_v39, 0.0 }
 0x243   : > { %v549_v45 = vpack.c.bf16 %v539_v40, %v539_v40  ;;  %v548_v3 = vpack.c.bf16 %v538_v43, %v538_v43  ;;  %vm1992_vm12 = vcmp.lt.s32.totalorder %v1445_v5, 17 }
 0x244   : > { %880 = vmatprep.subr.msk.bf16.mxu1 %vm1664_vm4, %v879_v41 }
 0x245   : > { %883 = vmatpush1.bf16.msk.msra.mxu1 %vm1686_vm10, %v882_v42  ;;  %v555_v46 = vsel %vm426_vm3, %v548_v3, 0 }
 0x246   : > { %884 = vmatprep.subr.msk.bf16.mxu1 %vm426_vm3, %v549_v45 }
 0x249   : > { %569 = vmatpush1.bf16.msra.mxu1 %v555_v46 }
 0x24c   : > { %885 = vmatmul.mubr.msk.bf16.vlgmr.msra.gmra.mrb[0].mxu1 %vm1989_vm6, %v550_v47  ;;  %vm1993_vm6 = vmmov %vm1992_vm12 }
 0x31f   : > { %v594_v48 = vpop.f32.mrb[0].mxu1 }
 0x320   : > { %v1763_v50 = vadd.f32 %v594_v48, %v1429_v0  ;;  %v596_v51 = vpop.f32.mrb[1].mxu1 }
 0x321   : > { %v597_v52 = vadd.f32 %v596_v51, %v1431_v1  ;;  %v598_v53 = vpop.f32.mrb[2].mxu1 }
 0x322   : > { %v599_v54 = vpop.f32.mrb[3].mxu1 }
 0x323   : > { %v1071_v55 = vpack.i.bf16 %v597_v52, %v1763_v50 }
 0x325   : > { %1072 = vrot.lane.b32.xlu1 %v1071_v55, %s1241_s30  ;;  %1067 = vrot.lane.b32.xlu0 %v1071_v55, %s1239_s25  ;;  %s729_s30 = scalar_lea.sflag [#allocation4], %s1415_s29 }
 0x329   : > { %1082 = vrot.lane.b32.xlu1 %v1071_v55, %s1240_s21  ;;  %1077 = vrot.lane.b32.xlu0 %v1071_v55, %s1238_s23  ;;  %s1842_s21 = scalar_lea.hbm %s1888_s4, %s918_s12 }
 0x32d   : > { %1092 = vrot.lane.b32.xlu1 %v1071_v55, %s1243_s9  ;;  %1087 = vrot.lane.b32.xlu0 %v1071_v55, %s1242_s8  ;;  %s1168_s8 = sshll.u32 %s1248_s19, 4  ;;  %s1169_s8 = int_to_ptr.vmem [resolvable:$false] %s1168_s8 }
 0x32e   : > { %s1170_s9 = scalar_lea.vmem %s1169_s8, 512  ;;  %p1171_p13 = scmp.lt.s32.totalorder %s1837_s11, %s1169_s8 }
 0x32f   : > { %p1172_p0 = scmp.lt.s32.totalorder %s1170_s9, %s1164_s10 }
 0x331   : > { %1102 = vrot.lane.b32.xlu1 %v1071_v55, %s1245_s14  ;;  %1097 = vrot.lane.b32.xlu0 %v1071_v55, %s1244_s13  ;;  %p1173_p5 = por %p1172_p0, %p1171_p13 }
 0x333   : > { %p1174_p10 = pnand %p1173_p5, %p1167_p12 }
 0x397   : > { %v1073_v0 = vpop.permute.xlu1 %1072  ;;  %v1068_v1 = vpop.permute.xlu0 %1067 }
 0x398   : > { %v1075_v57 = vunpack.i.h.bf16 %v1073_v0  ;;  %v1074_v58 = vunpack.i.l.bf16 %v1073_v0  ;;  %v1070_v59 = vunpack.i.h.bf16 %v1068_v1  ;;  %v1069_v60 = vunpack.i.l.bf16 %v1068_v1 }
 0x39a   : > { %v613_v61 = vsel %vm1990_vm8, %v1074_v58, %v1075_v57  ;;  %v614_v62 = vsel %vm1991_vm11, %v1075_v57, %v1074_v58  ;;  %v605_v63 = vsel %vm1992_vm12, %v1069_v60, %v1070_v59  ;;  %v606_v2 = vsel %vm1993_vm6, %v1070_v59, %v1069_v60 }
 0x39b   : > { %v887_v4 = vpack.c.bf16 %v613_v61, %v605_v63  ;;  %v890_v6 = vpack.c.bf16 %v614_v62, %v606_v2  ;;  %v1083_v7 = vpop.permute.xlu1 %1082  ;;  %v1078_v8 = vpop.permute.xlu0 %1077  ;;  %vm1994_vm8 = vcmp.lt.s32.totalorder %v1445_v5, 1  ;;  %vm1996_vm12 = vcmp.lt.s32.totalorder %v1445_v5, 15 }
 0x39c   : > { %v1085_v9 = vunpack.i.h.bf16 %v1083_v7  ;;  %v1084_v10 = vunpack.i.l.bf16 %v1083_v7  ;;  %v1080_v11 = vunpack.i.h.bf16 %v1078_v8  ;;  %v1079_v12 = vunpack.i.l.bf16 %v1078_v8  ;;  %vm1995_vm11 = vmmov %vm1994_vm8 }
 0x39d   : > { %888 = vmatprep.subr.msk.bf16.mxu0 %vm1479_vm15, %v887_v4  ;;  %vm1997_vm6 = vmmov %vm1996_vm12  ;;  %vm1998_vm15 = vcmp.lt.s32.totalorder %v1445_v5, 127 }
 0x39e   : > { %v629_v15 = vsel %vm1994_vm8, %v1084_v10, %v1085_v9  ;;  %v630_v17 = vsel %vm1995_vm11, %v1085_v9, %v1084_v10  ;;  %v621_v20 = vsel %vm1996_vm12, %v1079_v12, %v1080_v11  ;;  %v622_v21 = vsel %vm1997_vm6, %v1080_v11, %v1079_v12  ;;  %891 = vmatpush1.bf16.msk.msra.mxu0 %vm1489_vm1, %v890_v6  ;;  %vm1999_vm8 = vmmov %vm1998_vm15 }
 0x39f   : > { %v893_v24 = vpack.c.bf16 %v629_v15, %v621_v20  ;;  %v896_v25 = vpack.c.bf16 %v630_v17, %v622_v21  ;;  %v1093_v16 = vpop.permute.xlu1 %1092  ;;  %v1088_v19 = vpop.permute.xlu0 %1087 }
 0x3a0   : > { %v1090_v26 = vunpack.i.h.bf16 %v1088_v19  ;;  %v1089_v27 = vunpack.i.l.bf16 %v1088_v19  ;;  %v1095_v29 = vunpack.i.h.bf16 %v1093_v16  ;;  %v1094_v30 = vunpack.i.l.bf16 %v1093_v16 }
 0x3a1   : > { %894 = vmatprep.subr.msk.bf16.mxu0 %vm1552_vm7, %v893_v24  ;;  %vm2000_vm7 = vcmp.lt.s32.totalorder %v1445_v5, 113 }
 0x3a2   : > { %v637_v31 = vsel %vm1998_vm15, %v1089_v27, %v1090_v26  ;;  %v638_v32 = vsel %vm1999_vm8, %v1090_v26, %v1089_v27  ;;  %897 = vmatpush1.bf16.msk.msra.mxu0 %vm1568_vm2, %v896_v25  ;;  %v645_v44 = vsel %vm2000_vm7, %v1094_v30, %v1095_v29  ;;  %vm2001_vm1 = vmmov %vm2000_vm7  ;;  %vm2002_vm2 = vcmp.lt.s32.totalorder %v1445_v5, 111 }
 0x3a3   : > { %v899_v23 = vpack.c.bf16 %v638_v32, %v597_v52  ;;  %v902_v33 = vpack.c.bf16 %v637_v31, %v1763_v50  ;;  %v1103_v34 = vpop.permute.xlu1 %1102  ;;  %v1098_v35 = vpop.permute.xlu0 %1097  ;;  %v646_v40 = vsel %vm2001_vm1, %v1095_v29, %v1094_v30  ;;  %vm2003_vm11 = vmmov %vm2002_vm2 }
 0x3a4   : > { %v1105_v36 = vunpack.i.h.bf16 %v1103_v34  ;;  %v1104_v37 = vunpack.i.l.bf16 %v1103_v34  ;;  %v1100_v38 = vunpack.i.h.bf16 %v1098_v35  ;;  %v1099_v39 = vunpack.i.l.bf16 %v1098_v35 }
 0x3a5   : > { %900 = vmatprep.subr.msk.bf16.mxu0 %vm1579_vm5, %v899_v23  ;;  %vm2004_vm5 = vcmask 588800  }
 0x3a6   : > { %v661_v49 = vsel %vm2002_vm2, %v1104_v37, %v1105_v36  ;;  %v662_v41 = vsel %vm2003_vm11, %v1105_v36, %v1104_v37  ;;  %v653_v42 = vsel %vm381_vm13, %v1099_v39, %v1100_v38  ;;  %v654_v43 = vsel %vm381_vm13, %v1100_v38, %v1099_v39  ;;  %903 = vmatpush1.bf16.msk.msra.mxu0 %vm1652_vm14, %v902_v33 }
 0x3a7   : > { %v664_v56 = vsel %vm1630_vm9, %v662_v41, 0.0  ;;  %v905_v45 = vpack.c.bf16 %v654_v43, %v646_v40  ;;  %v908_v3 = vpack.c.bf16 %v653_v42, %v645_v44  ;;  %v663_v46 = vsel %vm1638_vm0, %v661_v49, 0.0 }
 0x3a8   : > { %v674_v47 = vpack.c.bf16 %v664_v56, %v664_v56  ;;  %v673_v48 = vpack.c.bf16 %v663_v46, %v663_v46 }
 0x3a9   : > { %906 = vmatprep.subr.msk.bf16.mxu0 %vm1664_vm4, %v905_v45 }
 0x3aa   : > { %909 = vmatpush1.bf16.msk.msra.mxu0 %vm1686_vm10, %v908_v3  ;;  %v680_v5 = vsel %vm426_vm3, %v673_v48, 0 }
 0x3ab   : > { %910 = vmatprep.subr.msk.bf16.mxu0 %vm426_vm3, %v674_v47 }
 0x3ae   : > { %694 = vmatpush1.bf16.msra.mxu0 %v680_v5 }
 0x3b1   : > { %911 = vmatmul.mubr.msk.bf16.vlgmr.msra.gmra.mrb[4].mxu0 %vm2004_vm5, %v675_v22 }
 0x484   : > { %v719_v13 = vpop.f32.mrb[4].mxu0 }
 0x485   : > { %726 = vst [vmem:[%s226_s7] sm:$0xff] %v719_v13  ;;  %v721_v18 = vpop.f32.mrb[5].mxu0 }
 0x486   : > { %727 = vst [vmem:[%s226_s7 + $0x8] sm:$0xff] %v721_v18  ;;  %v723_v28 = vpop.f32.mrb[6].mxu0 }
 0x487   : > { %v724_v14 = vpop.f32.mrb[7].mxu0 }
 0x488   : > { %1177 = shalt.err (!%p1174_p10)
}
 0x489   : > { %s1178_s29 = scalar_lea.hbm %s1842_s21, 256  ;;  %s1182_s28 = scalar_lea.hbm %s1888_s4, 512 }
 0x48a   : > { %p1179_p1 = scmp.ne.s32.totalorder %s1842_s21, %s1178_s29  ;;  %p1183_p3 = scmp.lt.u32.totalorder %s1842_s21, %s1888_s4 }
 0x48b   : > { %p1184_p11 = scmp.lt.u32.totalorder %s1182_s28, %s1178_s29  ;;  %p1186_p6 = scmp.lt.u32.totalorder %s1178_s29, %s1842_s21 }
 0x48c   : > { %p1180_p2 = pnand %p1179_p1, %p1366_p8 }
 0x48d   : > { %p1185_p4 = por %p1184_p11, %p1183_p3 }
 0x48e   : > { %p1181_p7 = pneg %p1180_p2 }
 0x48f   : > { %p1187_p9 = por %p1186_p6, %p1185_p4 }
 0x491   : > { %p1188_p12 = pnand %p1187_p9, %p1181_p7 }
 0x493   : > { %1191 = shalt.err (!%p1188_p12)
}
 0x494   : > { %925 = dma.vmem_to_hbm [thread:$0]  (%p1366_p8), %s1837_s11, 256, %s1842_s21, %s729_s30  }
 0x495 PF: > { %s755_s6 = sand.u32 1, %s1222_s15   ;;  %p2005_p13 = scmp.ne.s32.totalorder %s1900_s22, 0 }
 0x496   : > { %p2006_p0 = scmp.ge.s32.totalorder %s1234_s18, 2  ;;  %s756_s7 = scalar_lea.sflag [#allocation4], %s755_s6 }
 0x498   : > { %p936_p5 = pnand %p2006_p0, %p2005_p13 }
 0x49a   : > { %1217 = dma.done.wait (!%p936_p5), %s756_s7, 256  }
 0x49b   : > { %1219 = vsyncadd (!%p936_p5), %s756_s7, 4294967040  ;;  %p18_p10 = scmp.ge.s32.totalorder %s1322_s26, 4   ;;  %s2007_s15 = smov %s1226_s16 }
 0x49c   : > { %s2008_s16 = smov %s1230_s17  ;;  %s2009_s17 = smov %s1358_s20 }
 0x49d   : > { %s2010_s18 = smov %s1322_s26  ;;  %20 = sbr.rel (!%p18_p10) target bundleno = 6 (0x6), region = 85 }
 0x4a4   :  { %761 = vsyncpa [#allocation3], 1 }
 0x4a5   :  { %763 = vsyncpa [#allocation3 + $0x1], 1 }
 0x4a6   :  { %764 = vsyncpa [#allocation6], 1 }
 0x4a7   :  { %765 = vsyncpa [#allocation4], 1 }
 0x4a8   :  { %767 = vsyncpa [#allocation4 + $0x1], 1 }

</bundles_post_ra>
